<compile_context>
chip_gen: v6e
topology: v6e:2x2x1
jax: 0.10.0
libtpu: 0.0.40
codegen_flags: <defaults>
</compile_context>

<pallas_src>
import functools

import jax
import jax.numpy as jnp
from jax import lax
from jax.experimental import pallas as pl
from jax.experimental.pallas import tpu as pltpu


def _vq_kernel(x_ref, cb_aug_ref, cbt_ref, zq_ref, idx_ref, *, num_rq_steps):
    """Quantize one (D, TL) tile of token vectors (tokens on the lane axis).

    x_ref     : (D, TL)    tile of z_e in its native (B, D, L) layout
    cb_aug_ref: (K, D+1)   [-2*codebook | ||codebook||^2]  (resident)
    cbt_ref   : (D, K)     transposed codebook for the one-hot gather (resident)
    zq_ref    : (D, TL)    quantized vectors, written in native layout
    idx_ref   : (R, TL)    selected code indices, lane-dense
    """
    cb_aug = cb_aug_ref[...]                      # (K, D+1), native dtype -> MXU rate
    cbt = cbt_ref[...]                            # (D, K)
    x = x_ref[...]                                # (D, TL)
    if x.dtype != cb_aug.dtype:                   # static; usually a no-op
        x = x.astype(cb_aug.dtype)

    K = cb_aug.shape[0]
    D, TL = x.shape

    # Hoisted per-tile constants (JAX does not CSE broadcasts -> build once).
    iota_f = lax.broadcasted_iota(jnp.int32, (K, TL), 0).astype(jnp.float32)
    ones_row = jnp.ones((1, TL), dtype=x.dtype)
    big = jnp.float32(K)

    resid = x
    zq_acc = None
    for r in range(num_rq_steps):                 # static unroll (python int)
        # Augment the residual with a ones row so that
        #   dist = cb_aug @ resid_aug = ||c||^2 - 2<c, x>
        # (equal to the squared L2 distance up to a per-token constant) comes
        # straight off the MXU with f32 accumulation.
        resid_aug = jnp.concatenate([resid, ones_row], axis=0)          # (D+1, TL)
        dist = lax.dot_general(cb_aug, resid_aug, (((1,), (0,)), ((), ())),
                               preferred_element_type=jnp.float32)      # (K, TL)

        # Lowest-index argmin over the code axis (matches torch.argmin ties),
        # expressed as two min-reductions along the sublane axis; the masked
        # iota is reused for the one-hot compare.
        min_d = jnp.min(dist, axis=0, keepdims=True)                    # (1, TL)
        masked = jnp.where(dist <= min_d, iota_f, big)                  # (K, TL)
        idx_f = jnp.min(masked, axis=0, keepdims=True)                  # (1, TL)
        onehot = (masked == idx_f).astype(cbt.dtype)                    # (K, TL)

        # Gather the selected codes via a one-hot matmul (stays on the MXU),
        # producing the output directly in (D, TL) layout.
        sel = lax.dot_general(cbt, onehot, (((1,), (0,)), ((), ())),
                              preferred_element_type=jnp.float32)       # (D, TL)

        idx_ref[pl.ds(r, 1), :] = idx_f.astype(jnp.int32)
        zq_acc = sel if zq_acc is None else zq_acc + sel
        if r + 1 < num_rq_steps:                  # skip residual work on last step
            resid = resid - sel.astype(resid.dtype)

    zq_ref[...] = zq_acc.astype(zq_ref.dtype)


def _vmem_estimate(K, D, R, TL, x_bytes, cb_bytes):
    streamed = 2 * (2 * D * TL * x_bytes + R * TL * 4)       # double-buffered I/O tiles
    resident = 2 * (K * (D + 1) + D * K) * cb_bytes          # codebook inputs (<=2 bufs)
    interm = 4 * K * TL * 4 + 4 * (D + 1) * TL * 4           # dist/masked/onehot/iota
    return streamed + resident + interm


def _auto_tile_len(K, D, R, x_bytes, cb_bytes, tile_len, budget):
    TL = tile_len
    while TL > 128 and _vmem_estimate(K, D, R, TL, x_bytes, cb_bytes) > budget:
        TL = max(128, ((TL // 2) // 128) * 128)
    return TL


def vq1d_forward(z_e, codebook, *, num_rq_steps=1, tile_len=512,
                 gather_dtype=None, vmem_budget_bytes=48 << 20):
    """VQ1D.forward(z_e) -> {"indices", "v_q"}.  z_e: (B, D, L), codebook: (K, D).

    vmem_budget_bytes: tile-size budget; 48 MiB keeps headroom on v7x (64 MiB VMEM),
    pass ~96 MiB on v5e/v6e (128 MiB VMEM) for bigger token tiles with large K.
    """
    B, D, L = z_e.shape
    K, Dc = codebook.shape
    assert D == Dc, "codebook token_dim must match z_e channel dim"
    assert tile_len % 128 == 0
    R = int(num_rq_steps)

    # --- codebook-side constants, computed once per call (tiny vs. z_e traffic) ---
    cb_sq = jnp.sum(codebook.astype(jnp.float32) ** 2, axis=-1, keepdims=True)
    cb_aug = jnp.concatenate(
        [-2.0 * codebook, cb_sq.astype(codebook.dtype)], axis=1)        # (K, D+1)
    cbt = jnp.transpose(codebook)                                       # (D, K)
    if gather_dtype is not None:
        cbt = cbt.astype(gather_dtype)          # e.g. bf16 to halve VMEM residency

    x_bytes = z_e.dtype.itemsize
    cb_bytes = cb_aug.dtype.itemsize

    # --- choose the token-tile length (lane axis) against the VMEM budget ---
    tl_budget = _auto_tile_len(K, D, R, x_bytes, cb_bytes, tile_len, vmem_budget_bytes)
    if L <= tl_budget:
        TL = L                                   # full dim: always a legal block
        if B == 1 and L % 256 == 0:
            TL = L // 2                          # give both v7x TensorCores work
    else:
        TL = tl_budget
    L_pad = pl.cdiv(L, TL) * TL
    x = z_e if L_pad == L else jnp.pad(z_e, ((0, 0), (0, 0), (0, L_pad - L)))

    grid = (B, L_pad // TL)
    est = _vmem_estimate(K, D, R, TL, x_bytes, cb_bytes)
    vmem_limit = int(min(max(2 * est, 32 << 20), 128 << 20))
    flops = 2 * K * (2 * D + 1) * TL * R * grid[0] * grid[1]
    bytes_accessed = int(2 * B * D * L_pad * x_bytes + B * R * L_pad * 4
                         + cb_aug.size * cb_bytes + cbt.size * cbt.dtype.itemsize)
    cost = pl.CostEstimate(flops=int(flops), transcendentals=0,
                           bytes_accessed=bytes_accessed)

    kernel = functools.partial(_vq_kernel, num_rq_steps=R)
    out_shapes = (
        jax.ShapeDtypeStruct((B, D, L_pad), z_e.dtype),
        jax.ShapeDtypeStruct((B, R, L_pad), jnp.int32),
    )

    def build(codebook_pipeline_mode):
        cb_kwargs = ({} if codebook_pipeline_mode is None
                     else dict(pipeline_mode=codebook_pipeline_mode))
        return pl.pallas_call(
            kernel,
            out_shape=out_shapes,
            grid_spec=pltpu.PrefetchScalarGridSpec(
                num_scalar_prefetch=0,
                grid=grid,
                in_specs=[
                    pl.BlockSpec((None, D, TL), lambda b, j: (b, 0, j)),      # z_e tile
                    pl.BlockSpec((K, D + 1), lambda b, j: (0, 0), **cb_kwargs),  # cb_aug
                    pl.BlockSpec((D, K), lambda b, j: (0, 0), **cb_kwargs),      # cb^T
                ],
                out_specs=[
                    pl.BlockSpec((None, D, TL), lambda b, j: (b, 0, j)),      # v_q tile
                    pl.BlockSpec((None, R, TL), lambda b, j: (b, 0, j)),      # indices
                ],
            ),
            compiler_params=pltpu.CompilerParams(
                dimension_semantics=("parallel", "parallel"),
                vmem_limit_bytes=vmem_limit),
            cost_estimate=cost,
        )

    try:
        # Single-buffer the grid-invariant codebook inputs (constant index_map ->
        # no re-DMA needed; halves their VMEM residency).
        zq, idx = build(pl.Buffered(1))(x, cb_aug, cbt)
    except Exception:
        # pipeline_mode not supported on this jax build: fall back to default
        # double-buffered (still correct, slightly more codebook VMEM).
        zq, idx = build(None)(x, cb_aug, cbt)

    if L_pad != L:
        zq = zq[:, :, :L]
        idx = idx[:, :, :L]
    v_q = zq                                            # already (B, D, L)
    indices = jnp.transpose(idx, (0, 2, 1))             # (B, L, num_rq_steps), tiny
    # TODO(synk): `extract_losses` / 'emb' output and the code_sg stop-gradient are
    # training/backward-only concerns; forward values here match the module.
    return {"indices": indices, "v_q": v_q}


if __name__ == "__main__":
    key = jax.random.PRNGKey(0)
    k_z, k_cb = jax.random.split(key)

    # Small shapes consistent with the module: token_dim=32, num_tokens=256,
    # batch=2, seq_len=16, num_rq_steps=1.
    B, D, L = 2, 32, 16
    K = 256
    num_rq_steps = 1

    z_e = jax.random.normal(k_z, (B, D, L), dtype=jnp.float32)
    # nn.Parameter(torch.rand(num_tokens, token_dim)) -> uniform [0, 1)
    codebook = jax.random.uniform(k_cb, (K, D), dtype=jnp.float32)

    out = vq1d_forward(z_e, codebook, num_rq_steps=num_rq_steps)
    jax.block_until_ready(out)

    # Pure-JAX reference check (single RQ step).
    xt = jnp.transpose(z_e, (0, 2, 1)).reshape(-1, D)
    dist = jnp.sum((xt[:, None, :] - codebook[None, :, :]) ** 2, axis=-1)
    idx_ref = jnp.argmin(dist, axis=-1).astype(jnp.int32)
    vq_ref = codebook[idx_ref].reshape(B, L, D).transpose(0, 2, 1)

    assert out["v_q"].shape == (B, D, L)
    assert out["indices"].shape == (B, L, num_rq_steps)
    assert jnp.array_equal(out["indices"].reshape(-1), idx_ref), "indices mismatch"
    assert jnp.allclose(out["v_q"], vq_ref, atol=1e-4), "v_q mismatch"

    print("KERNEL_OK")
</pallas_src>

<mosaic_0001>
module attributes {stable_mosaic.version = 11 : i64} {
  func.func @_vq_kernel(%arg0: i32, %arg1: i32, %arg2: memref<1x32x16xf32, #tpu.memory_space<vmem>>, %arg3: memref<256x33xf32, #tpu.memory_space<vmem>>, %arg4: memref<32x256xf32, #tpu.memory_space<vmem>>, %arg5: memref<1x32x16xf32, #tpu.memory_space<vmem>>, %arg6: memref<1x1x16xi32, #tpu.memory_space<vmem>>) attributes {dimension_semantics = [#tpu.dimension_semantics<parallel>, #tpu.dimension_semantics<parallel>], iteration_bounds = array<i64: 2, 1>, scalar_prefetch = 0 : i64, scratch_operands = 0 : i64, tpu.core_type = #tpu.core_type<tc>, window_params = [{transform_indices = @transform_0, window_bounds = array<i64: 1, 32, 16>}, {pipeline_mode = #tpu.pipeline_mode<synchronous>, transform_indices = @transform_1, window_bounds = array<i64: 256, 33>}, {pipeline_mode = #tpu.pipeline_mode<synchronous>, transform_indices = @transform_2, window_bounds = array<i64: 32, 256>}, {transform_indices = @transform_3, window_bounds = array<i64: 1, 32, 16>}, {transform_indices = @transform_4, window_bounds = array<i64: 1, 1, 16>}]} {
    %c0 = arith.constant 0 : index
    %c0_0 = arith.constant 0 : index
    %0 = vector.load %arg3[%c0, %c0_0] : memref<256x33xf32, #tpu.memory_space<vmem>>, vector<256x33xf32>
    %c0_1 = arith.constant 0 : index
    %c0_2 = arith.constant 0 : index
    %1 = vector.load %arg4[%c0_1, %c0_2] : memref<32x256xf32, #tpu.memory_space<vmem>>, vector<32x256xf32>
    %c0_3 = arith.constant 0 : index
    %c0_4 = arith.constant 0 : index
    %c0_5 = arith.constant 0 : index
    %2 = vector.load %arg2[%c0_3, %c0_4, %c0_5] : memref<1x32x16xf32, #tpu.memory_space<vmem>>, vector<1x32x16xf32>
    %3 = vector.shape_cast %2 : vector<1x32x16xf32> to vector<32x16xf32>
    %4 = tpu.iota {dimensions = array<i32: 0>} : vector<256x16xi32>
    %5 = arith.sitofp %4 : vector<256x16xi32> to vector<256x16xf32>
    %cst = arith.constant 1.000000e+00 : f32
    %6 = vector.broadcast %cst : f32 to vector<1x16xf32>
    %7 = tpu.concatenate %3, %6 in 0 : vector<32x16xf32>, vector<1x16xf32> -> vector<33x16xf32>
    %cst_6 = arith.constant dense<0.000000e+00> : vector<256x16xf32>
    %8 = tpu.matmul %0, %7, %cst_6 {dimension_numbers = #tpu.dot_dimension_numbers<[1], [0], [0], [1], [0, 0, 1, 1], [], []>} : vector<256x33xf32>, vector<33x16xf32>, vector<256x16xf32> -> vector<256x16xf32>
    %cst_7 = arith.constant dense<0x7F800000> : vector<16xf32>
    %9 = vector.multi_reduction <minimumf>, %8, %cst_7 [0] : vector<256x16xf32> to vector<16xf32>
    %10 = vector.shape_cast %9 : vector<16xf32> to vector<1x16xf32>
    %11 = vector.broadcast %10 : vector<1x16xf32> to vector<256x16xf32>
    %12 = arith.cmpf ole, %8, %11 : vector<256x16xf32>
    %cst_8 = arith.constant 2.560000e+02 : f32
    %13 = vector.broadcast %cst_8 : f32 to vector<256x16xf32>
    %14 = arith.select %12, %5, %13 : vector<256x16xi1>, vector<256x16xf32>
    %cst_9 = arith.constant dense<0x7F800000> : vector<16xf32>
    %15 = vector.multi_reduction <minimumf>, %14, %cst_9 [0] : vector<256x16xf32> to vector<16xf32>
    %16 = vector.shape_cast %15 : vector<16xf32> to vector<1x16xf32>
    %17 = vector.broadcast %16 : vector<1x16xf32> to vector<256x16xf32>
    %18 = arith.cmpf oeq, %14, %17 : vector<256x16xf32>
    %19 = arith.extui %18 : vector<256x16xi1> to vector<256x16xi32>
    %20 = arith.sitofp %19 : vector<256x16xi32> to vector<256x16xf32>
    %cst_10 = arith.constant dense<0.000000e+00> : vector<32x16xf32>
    %21 = tpu.matmul %1, %20, %cst_10 {dimension_numbers = #tpu.dot_dimension_numbers<[1], [0], [0], [1], [0, 0, 1, 1], [], []>} : vector<32x256xf32>, vector<256x16xf32>, vector<32x16xf32> -> vector<32x16xf32>
    %22 = arith.fptosi %16 : vector<1x16xf32> to vector<1x16xi32>
    %c0_11 = arith.constant 0 : index
    %c0_12 = arith.constant 0 : index
    %c0_13 = arith.constant 0 : index
    %23 = vector.load %arg6[%c0_11, %c0_12, %c0_13] : memref<1x1x16xi32, #tpu.memory_space<vmem>>, vector<1x1x16xi32>
    %24 = vector.shape_cast %23 : vector<1x1x16xi32> to vector<1x16xi32>
    %25 = vector.shape_cast %22 : vector<1x16xi32> to vector<1x1x16xi32>
    tpu.vector_store %arg6[%c0_11, %c0_12, %c0_13], %25 {strides = array<i32>} : memref<1x1x16xi32, #tpu.memory_space<vmem>>, vector<1x1x16xi32>,
    %c0_14 = arith.constant 0 : index
    %c0_15 = arith.constant 0 : index
    %c0_16 = arith.constant 0 : index
    %26 = vector.load %arg5[%c0_14, %c0_15, %c0_16] : memref<1x32x16xf32, #tpu.memory_space<vmem>>, vector<1x32x16xf32>
    %27 = vector.shape_cast %26 : vector<1x32x16xf32> to vector<32x16xf32>
    %28 = vector.shape_cast %21 : vector<32x16xf32> to vector<1x32x16xf32>
    tpu.vector_store %arg5[%c0_14, %c0_15, %c0_16], %28 {strides = array<i32>} : memref<1x32x16xf32, #tpu.memory_space<vmem>>, vector<1x32x16xf32>,
    return
  }
  func.func @transform_0(%arg0: i32, %arg1: i32) -> (i32, i32, i32) {
    %c0_i32 = arith.constant 0 : i32
    %c0_i32_0 = arith.constant 0 : i32
    return %arg0, %c0_i32, %arg1 : i32, i32, i32
  }
  func.func @transform_1(%arg0: i32, %arg1: i32) -> (i32, i32) {
    %c0_i32 = arith.constant 0 : i32
    %c0_i32_0 = arith.constant 0 : i32
    %c0_i32_1 = arith.constant 0 : i32
    return %c0_i32, %c0_i32_0 : i32, i32
  }
  func.func @transform_2(%arg0: i32, %arg1: i32) -> (i32, i32) {
    %c0_i32 = arith.constant 0 : i32
    %c0_i32_0 = arith.constant 0 : i32
    %c0_i32_1 = arith.constant 0 : i32
    return %c0_i32, %c0_i32_0 : i32, i32
  }
  func.func @transform_3(%arg0: i32, %arg1: i32) -> (i32, i32, i32) {
    %c0_i32 = arith.constant 0 : i32
    %c0_i32_0 = arith.constant 0 : i32
    return %arg0, %c0_i32, %arg1 : i32, i32, i32
  }
  func.func @transform_4(%arg0: i32, %arg1: i32) -> (i32, i32, i32) {
    %c0_i32 = arith.constant 0 : i32
    %c0_i32_0 = arith.constant 0 : i32
    return %arg0, %c0_i32, %arg1 : i32, i32, i32
  }
}

module attributes {stable_mosaic.version = 11 : i64} {
  func.func @_vq_kernel(%arg0: i32, %arg1: i32, %arg2: memref<1x32x16xf32, #tpu.memory_space<vmem>>, %arg3: memref<256x33xf32, #tpu.memory_space<vmem>>, %arg4: memref<32x256xf32, #tpu.memory_space<vmem>>, %arg5: memref<1x32x16xf32, #tpu.memory_space<vmem>>, %arg6: memref<1x1x16xi32, #tpu.memory_space<vmem>>) attributes {dimension_semantics = [#tpu.dimension_semantics<parallel>, #tpu.dimension_semantics<parallel>], iteration_bounds = array<i64: 2, 1>, scalar_prefetch = 0 : i64, scratch_operands = 0 : i64, tpu.core_type = #tpu.core_type<tc>, window_params = [{transform_indices = @transform_0, window_bounds = array<i64: 1, 32, 16>}, {pipeline_mode = #tpu.pipeline_mode<synchronous>, transform_indices = @transform_1, window_bounds = array<i64: 256, 33>}, {pipeline_mode = #tpu.pipeline_mode<synchronous>, transform_indices = @transform_2, window_bounds = array<i64: 32, 256>}, {transform_indices = @transform_3, window_bounds = array<i64: 1, 32, 16>}, {transform_indices = @transform_4, window_bounds = array<i64: 1, 1, 16>}]} {
    %c0 = arith.constant 0 : index
    %c0_0 = arith.constant 0 : index
    %0 = vector.load %arg3[%c0, %c0_0] : memref<256x33xf32, #tpu.memory_space<vmem>>, vector<256x33xf32>
    %c0_1 = arith.constant 0 : index
    %c0_2 = arith.constant 0 : index
    %1 = vector.load %arg4[%c0_1, %c0_2] : memref<32x256xf32, #tpu.memory_space<vmem>>, vector<32x256xf32>
    %c0_3 = arith.constant 0 : index
    %c0_4 = arith.constant 0 : index
    %c0_5 = arith.constant 0 : index
    %2 = vector.load %arg2[%c0_3, %c0_4, %c0_5] : memref<1x32x16xf32, #tpu.memory_space<vmem>>, vector<1x32x16xf32>
    %3 = vector.shape_cast %2 : vector<1x32x16xf32> to vector<32x16xf32>
    %4 = tpu.iota {dimensions = array<i32: 0>} : vector<256x16xi32>
    %5 = arith.sitofp %4 : vector<256x16xi32> to vector<256x16xf32>
    %cst = arith.constant 1.000000e+00 : f32
    %6 = vector.broadcast %cst : f32 to vector<1x16xf32>
    %7 = tpu.concatenate %3, %6 in 0 : vector<32x16xf32>, vector<1x16xf32> -> vector<33x16xf32>
    %cst_6 = arith.constant dense<0.000000e+00> : vector<256x16xf32>
    %8 = tpu.matmul %0, %7, %cst_6 {dimension_numbers = #tpu.dot_dimension_numbers<[1], [0], [0], [1], [0, 0, 1, 1], [], []>} : vector<256x33xf32>, vector<33x16xf32>, vector<256x16xf32> -> vector<256x16xf32>
    %cst_7 = arith.constant dense<0x7F800000> : vector<16xf32>
    %9 = vector.multi_reduction <minimumf>, %8, %cst_7 [0] : vector<256x16xf32> to vector<16xf32>
    %10 = vector.shape_cast %9 : vector<16xf32> to vector<1x16xf32>
    %11 = vector.broadcast %10 : vector<1x16xf32> to vector<256x16xf32>
    %12 = arith.cmpf ole, %8, %11 : vector<256x16xf32>
    %cst_8 = arith.constant 2.560000e+02 : f32
    %13 = vector.broadcast %cst_8 : f32 to vector<256x16xf32>
    %14 = arith.select %12, %5, %13 : vector<256x16xi1>, vector<256x16xf32>
    %cst_9 = arith.constant dense<0x7F800000> : vector<16xf32>
    %15 = vector.multi_reduction <minimumf>, %14, %cst_9 [0] : vector<256x16xf32> to vector<16xf32>
    %16 = vector.shape_cast %15 : vector<16xf32> to vector<1x16xf32>
    %17 = vector.broadcast %16 : vector<1x16xf32> to vector<256x16xf32>
    %18 = arith.cmpf oeq, %14, %17 : vector<256x16xf32>
    %19 = arith.extui %18 : vector<256x16xi1> to vector<256x16xi32>
    %20 = arith.sitofp %19 : vector<256x16xi32> to vector<256x16xf32>
    %cst_10 = arith.constant dense<0.000000e+00> : vector<32x16xf32>
    %21 = tpu.matmul %1, %20, %cst_10 {dimension_numbers = #tpu.dot_dimension_numbers<[1], [0], [0], [1], [0, 0, 1, 1], [], []>} : vector<32x256xf32>, vector<256x16xf32>, vector<32x16xf32> -> vector<32x16xf32>
    %22 = arith.fptosi %16 : vector<1x16xf32> to vector<1x16xi32>
    %c0_11 = arith.constant 0 : index
    %c0_12 = arith.constant 0 : index
    %c0_13 = arith.constant 0 : index
    %23 = vector.load %arg6[%c0_11, %c0_12, %c0_13] : memref<1x1x16xi32, #tpu.memory_space<vmem>>, vector<1x1x16xi32>
    %24 = vector.shape_cast %23 : vector<1x1x16xi32> to vector<1x16xi32>
    %25 = vector.shape_cast %22 : vector<1x16xi32> to vector<1x1x16xi32>
    tpu.vector_store %arg6[%c0_11, %c0_12, %c0_13], %25 {strides = array<i32>} : memref<1x1x16xi32, #tpu.memory_space<vmem>>, vector<1x1x16xi32>,
    %c0_14 = arith.constant 0 : index
    %c0_15 = arith.constant 0 : index
    %c0_16 = arith.constant 0 : index
    %26 = vector.load %arg5[%c0_14, %c0_15, %c0_16] : memref<1x32x16xf32, #tpu.memory_space<vmem>>, vector<1x32x16xf32>
    %27 = vector.shape_cast %26 : vector<1x32x16xf32> to vector<32x16xf32>
    %28 = vector.shape_cast %21 : vector<32x16xf32> to vector<1x32x16xf32>
    tpu.vector_store %arg5[%c0_14, %c0_15, %c0_16], %28 {strides = array<i32>} : memref<1x32x16xf32, #tpu.memory_space<vmem>>, vector<1x32x16xf32>,
    return
  }
  func.func @transform_0(%arg0: i32, %arg1: i32) -> (i32, i32, i32) {
    %c0_i32 = arith.constant 0 : i32
    %c0_i32_0 = arith.constant 0 : i32
    return %arg0, %c0_i32, %arg1 : i32, i32, i32
  }
  func.func @transform_1(%arg0: i32, %arg1: i32) -> (i32, i32) {
    %c0_i32 = arith.constant 0 : i32
    %c0_i32_0 = arith.constant 0 : i32
    %c0_i32_1 = arith.constant 0 : i32
    return %c0_i32, %c0_i32_0 : i32, i32
  }
  func.func @transform_2(%arg0: i32, %arg1: i32) -> (i32, i32) {
    %c0_i32 = arith.constant 0 : i32
    %c0_i32_0 = arith.constant 0 : i32
    %c0_i32_1 = arith.constant 0 : i32
    return %c0_i32, %c0_i32_0 : i32, i32
  }
  func.func @transform_3(%arg0: i32, %arg1: i32) -> (i32, i32, i32) {
    %c0_i32 = arith.constant 0 : i32
    %c0_i32_0 = arith.constant 0 : i32
    return %arg0, %c0_i32, %arg1 : i32, i32, i32
  }
  func.func @transform_4(%arg0: i32, %arg1: i32) -> (i32, i32, i32) {
    %c0_i32 = arith.constant 0 : i32
    %c0_i32_0 = arith.constant 0 : i32
    return %arg0, %c0_i32, %arg1 : i32, i32, i32
  }
}

</mosaic_0001>

<bundles_post_ra>
// kernel: tpu_custom_call.1
= control target key start
LH: loop header
LB: loop body
LE: loop exit
PB: predicated region body
PF: predicated region fallthrough
CT: control target
= control target key end

     0   :  { %10 = vsyncpa [#allocation3], 0  ;;  %s2594_s0 = inlined_call_operand.vmem [shape: f32[2,32,16], index: 0, kind: input, shape index: {}]   ;;  %s2595_s1 = inlined_call_operand.vmem [shape: f32[256,33], index: 1, kind: input, shape index: {}]   ;;  %s2596_s2 = inlined_call_operand.vmem [shape: f32[32,256], index: 2, kind: input, shape index: {}]   ;;  %s2597_s3 = inlined_call_operand.vmem [shape: f32[2,32,16], index: 3, kind: output, shape index: {0}]   ;;  %s2598_s4 = inlined_call_operand.hbm [shape: s32[2,1,16], index: 4, kind: output, shape index: {1}]  }
   0x1   :  { %12 = vsyncpa [#allocation3 + $0x1], 0  ;;  %s1611_s15 = smov 0   ;;  %s1613_s16 = smov 0  }
   0x2   :  { %s1615_s17 = smov 0   ;;  %s1617_s18 = smov 0  }
   0x3   :  { %s1619_s19 = smov 0   ;;  %s1621_s20 = smov 0  }
   0x4 LB: > { %s1198_s21 = sadd.s32 4294967295, %s1582_s20   ;;  %s1199_s22 = sadd.s32 4294967294, %s1582_s20   ;;  %s1582_s20 = sphi %s1621_s20, %s18_s20   ;;  %s1578_s19 = sphi %s1619_s19, %s2723_s19   ;;  %s1574_s18 = sphi %s1617_s18, %s2722_s18   ;;  %s1570_s17 = sphi %s1615_s17, %s2721_s17   ;;  %s1566_s16 = sphi %s1613_s16, %s2720_s16   ;;  %s1562_s15 = sphi %s1611_s15, %s2719_s15  }
   0x5   : > { %s30_s23 = sadd.s32 1, %s1578_s19  ;;  %s137_s24 = sadd.s32 1, %s1570_s17 }
   0x6   : > { %p32_p0 = scmp.ge.s32.totalorder %s30_s23, 2  ;;  %p147_p1 = scmp.ne.s32.totalorder %s1570_s17, %s1566_s16 }
   0x7   : > { %p148_p2 = scmp.eq.s32.totalorder %s1198_s21, 1  ;;  %p153_p3 = scmp.ne.s32.totalorder %s1566_s16, %s1562_s15 }
   0x8   : > { %s2725_s23 = smov (%p32_p0, %s30_s23), 0  ;;  %p154_p5 = scmp.eq.s32.totalorder %s1199_s22, 1 }
   0x9   : > { %p1651_p4 = por %p148_p2, %p147_p1  ;;  %s132_s26 = ssub.s32 %s1578_s19, %s2725_s23 }
   0xa   : > { %p1202_p6 = scmp.ge.s32.totalorder %s1582_s20, 1  ;;  %p135_p7 = scmp.eq.s32.totalorder %s132_s26, 0 }
   0xb   : > { %p1658_p8 = por %p154_p5, %p153_p3  ;;  %p189_p9 = scmp.lt.s32.totalorder %s1582_s20, 3 }
   0xc   : > { %s1664_s28 = scalar_select %p135_p7, %s1570_s17, %s137_s24  }
   0xd   : > { %p190_p10 = pnand %p1202_p6, %p189_p9 }
   0xf   : > { %193 = sbr.rel (%p190_p10) target bundleno = 622 (0x26e), region = 32 }
  0x14   : > { %vm447_vm0 = vcmask 1040384   ;;  %p225_p11 = scmp.lt.s32.totalorder %s1574_s18, 1  ;;  %v241_v0 = vld [vmem:[%s2595_s1] sm:$0xff]  ;;  %vm350_vm1 = vcmask 269312   ;;  %v2599_v1 = vmov 1.0   ;;  %v242_v6 = vld [vmem:[%s2595_s1 + $0x8] sm:$0xff]  ;;  %v285_v58 = vlaneseq }
  0x15   : > { %1390 = vmatprep.subr.msk.mxu0 %vm447_vm0, %v2599_v1  ;;  %1400 = vmatprep.mubr.msk.f32.mxu0 %vm350_vm1, %v241_v0  ;;  %v243_v7 = vld [vmem:[%s2595_s1 + $0x10] sm:$0xff]  ;;  %v244_v8 = vld [vmem:[%s2595_s1 + $0x18] sm:$0xff]  ;;  %v245_v9 = vld [vmem:[%s2595_s1 + $0x20] sm:$0xff]  ;;  %vm2613_vm2 = vcmask 130048   ;;  %s223_s26 = sand.u32 1, %s1566_s16   ;;  %s1304_s8 = sshll.u32 %s1574_s18, 4 }
  0x16   : > { %1391 = vmatpush3.msk.msra.mxu0 %vm447_vm0, %v2599_v1  ;;  %s1674_s5 = scalar_select %p225_p11, %s1574_s18, 1  ;;  %v246_v10 = vld [vmem:[%s2595_s1 + $0x28] sm:$0xff]  ;;  %v247_v11 = vld [vmem:[%s2595_s1 + $0x30] sm:$0xff]  ;;  %v248_v12 = vld [vmem:[%s2595_s1 + $0x38] sm:$0xff]  ;;  %v1853_v61 = vshrl.u32 %v285_v58, 7 }
  0x17   : > { %v249_v13 = vld [vmem:[%s2595_s1 + $0x40] sm:$0xff]  ;;  %v250_v14 = vld [vmem:[%s2595_s1 + $0x48] sm:$0xff]  ;;  %v251_v15 = vld [vmem:[%s2595_s1 + $0x50] sm:$0xff]  ;;  %s2462_s29 = scalar_lea.vmem [#allocation2], %s223_s26  ;;  %s1090_s11 = scalar_lea.hbm %s2598_s4, %s1304_s8 }
  0x18   : > { %s1307_s6 = sshll.u32 %s1674_s5, 5  ;;  %v252_v16 = vld [vmem:[%s2595_s1 + $0x58] sm:$0xff]  ;;  %v253_v17 = vld [vmem:[%s2595_s1 + $0x60] sm:$0xff]  ;;  %v254_v18 = vld [vmem:[%s2595_s1 + $0x68] sm:$0xff]  ;;  %v2015_v1 = vadd.s32 168, %v1853_v61  ;;  %s1092_s12 = sshll.u32 %s2462_s29, 4  ;;  %s1093_s12 = int_to_ptr.vmem [resolvable:$true] %s1092_s12 }
  0x19   : > { %s232_s9 = scalar_lea.vmem %s2594_s0, %s1307_s6  ;;  %v255_v19 = vld [vmem:[%s2595_s1 + $0x70] sm:$0xff]  ;;  %v256_v20 = vld [vmem:[%s2595_s1 + $0x78] sm:$0xff]  ;;  %v257_v21 = vld [vmem:[%s2595_s1 + $0x80] sm:$0xff]  ;;  %s1076_s13 = scalar_lea.sflag [#allocation3], %s223_s26 }
  0x1a   : > { %v284_v2 = vld [vmem:[%s232_s9 + $0x18] sm:$0xff]  ;;  %v283_v3 = vld [vmem:[%s232_s9 + $0x10] sm:$0xff]  ;;  %v282_v4 = vld [vmem:[%s232_s9 + $0x8] sm:$0xff]  ;;  %s1506_s14 = scalar_lea.vmem %s1093_s12, 16  ;;  %s1585_s21 = smov [#allocation2]  }
  0x1b   : > { %1392 = vmatprep.subr.mxu0 %v284_v2  ;;  %v281_v5 = vld [vmem:[%s232_s9] sm:$0xff]  ;;  %v258_v22 = vld [vmem:[%s2595_s1 + $0x88] sm:$0xff]  ;;  %v259_v23 = vld [vmem:[%s2595_s1 + $0x90] sm:$0xff]  ;;  %p1507_p12 = scmp.ne.s32.totalorder %s1093_s12, %s1506_s14  ;;  %s1510_s22 = sshll.u32 %s1585_s21, 4  ;;  %s1511_s22 = int_to_ptr.vmem [resolvable:$false] %s1510_s22 }
  0x1c   : > { %1393 = vmatpush3.msra.mxu0 %v284_v2  ;;  %v260_v24 = vld [vmem:[%s2595_s1 + $0x98] sm:$0xff]  ;;  %v261_v25 = vld [vmem:[%s2595_s1 + $0xa0] sm:$0xff]  ;;  %v262_v26 = vld [vmem:[%s2595_s1 + $0xa8] sm:$0xff]  ;;  %v1862_v2 = vadd.s32 8, %v1853_v61  ;;  %s1512_s24 = scalar_lea.vmem %s1511_s22, 32  ;;  %p1513_p1 = scmp.lt.s32.totalorder %s1093_s12, %s1511_s22 }
  0x1d   : > { %1394 = vmatprep.subr.mxu0 %v283_v3  ;;  %v263_v27 = vld [vmem:[%s2595_s1 + $0xb0] sm:$0xff]  ;;  %v264_v28 = vld [vmem:[%s2595_s1 + $0xb8] sm:$0xff]  ;;  %v265_v29 = vld [vmem:[%s2595_s1 + $0xc0] sm:$0xff]  ;;  %p1508_p13 = pnand %p1507_p12, %p1651_p4  ;;  %p1514_p2 = scmp.lt.s32.totalorder %s1512_s24, %s1506_s14 }
  0x1e   : > { %1395 = vmatpush3.msra.mxu0 %v283_v3  ;;  %v266_v30 = vld [vmem:[%s2595_s1 + $0xc8] sm:$0xff]  ;;  %v267_v31 = vld [vmem:[%s2595_s1 + $0xd0] sm:$0xff]  ;;  %v268_v32 = vld [vmem:[%s2595_s1 + $0xd8] sm:$0xff] }
  0x1f   : > { %1396 = vmatprep.subr.mxu0 %v282_v4  ;;  %v269_v33 = vld [vmem:[%s2595_s1 + $0xe0] sm:$0xff]  ;;  %v270_v34 = vld [vmem:[%s2595_s1 + $0xe8] sm:$0xff]  ;;  %v271_v35 = vld [vmem:[%s2595_s1 + $0xf0] sm:$0xff]  ;;  %p1509_p0 = pneg %p1508_p13  ;;  %p1515_p3 = por %p1514_p2, %p1513_p1 }
  0x20   : > { %1397 = vmatpush3.msra.mxu0 %v282_v4  ;;  %v272_v36 = vld [vmem:[%s2595_s1 + $0xf8] sm:$0xff]  ;;  %v274_v55 = vld [vmem:[%s2596_s2 + $0x8] sm:$0xff] }
  0x21   : > { %1398 = vmatprep.subr.mxu0 %v281_v5  ;;  %1039 = vmatprep.mubr.f32.mxu1 %v274_v55  ;;  %p1516_p5 = pnand %p1515_p3, %p1509_p0 }
  0x22   : > { %1399 = vmatpush3.msra.mxu0 %v281_v5 }
  0x23   : > { %1401 = vmatmul.mubr.msk.f32.vlgmr.msra.gmra.mxu0 %vm350_vm1, %v242_v6 }
  0x24   : > { %1403 = vmatprep.mubr.msk.f32.mxu0 %vm350_vm1, %v243_v7 }
  0x27   : > { %1404 = vmatmul.mubr.msk.f32.gmra.mxu0 %vm350_vm1, %v244_v8 }
  0x28   : > { %1406 = vmatprep.mubr.msk.f32.mxu0 %vm350_vm1, %v245_v9 }
  0x2b   : > { %1407 = vmatmul.mubr.msk.f32.gmra.mxu0 %vm350_vm1, %v246_v10 }
  0x2c   : > { %1409 = vmatprep.mubr.msk.f32.mxu0 %vm350_vm1, %v247_v11 }
  0x2f   : > { %1410 = vmatmul.mubr.msk.f32.gmra.mxu0 %vm350_vm1, %v248_v12 }
  0x30   : > { %1412 = vmatprep.mubr.msk.f32.mxu0 %vm350_vm1, %v249_v13 }
  0x33   : > { %1413 = vmatmul.mubr.msk.f32.gmra.mxu0 %vm350_vm1, %v250_v14 }
  0x34   : > { %1415 = vmatprep.mubr.msk.f32.mxu0 %vm350_vm1, %v251_v15 }
  0x37   : > { %1416 = vmatmul.mubr.msk.f32.gmra.mxu0 %vm350_vm1, %v252_v16 }
  0x38   : > { %1418 = vmatprep.mubr.msk.f32.mxu0 %vm350_vm1, %v253_v17 }
  0x3b   : > { %1419 = vmatmul.mubr.msk.f32.gmra.mxu0 %vm350_vm1, %v254_v18 }
  0x3c   : > { %1421 = vmatprep.mubr.msk.f32.mxu0 %vm350_vm1, %v255_v19 }
  0x3f   : > { %1422 = vmatmul.mubr.msk.f32.gmra.mxu0 %vm350_vm1, %v256_v20 }
  0x40   : > { %1424 = vmatprep.mubr.msk.f32.mxu0 %vm350_vm1, %v257_v21 }
  0x43   : > { %1425 = vmatmul.mubr.msk.f32.gmra.mxu0 %vm350_vm1, %v258_v22 }
  0x44   : > { %1427 = vmatprep.mubr.msk.f32.mxu0 %vm350_vm1, %v259_v23 }
  0x47   : > { %1428 = vmatmul.mubr.msk.f32.gmra.mxu0 %vm350_vm1, %v260_v24 }
  0x48   : > { %1430 = vmatprep.mubr.msk.f32.mxu0 %vm350_vm1, %v261_v25 }
  0x4b   : > { %1431 = vmatmul.mubr.msk.f32.gmra.mxu0 %vm350_vm1, %v262_v26 }
  0x4c   : > { %1433 = vmatprep.mubr.msk.f32.mxu0 %vm350_vm1, %v263_v27 }
  0x4f   : > { %1434 = vmatmul.mubr.msk.f32.gmra.mxu0 %vm350_vm1, %v264_v28 }
  0x50   : > { %1436 = vmatprep.mubr.msk.f32.mxu0 %vm350_vm1, %v265_v29 }
  0x53   : > { %1437 = vmatmul.mubr.msk.f32.gmra.mxu0 %vm350_vm1, %v266_v30 }
  0x54   : > { %1439 = vmatprep.mubr.msk.f32.mxu0 %vm350_vm1, %v267_v31 }
  0x57   : > { %1440 = vmatmul.mubr.msk.f32.gmra.mxu0 %vm350_vm1, %v268_v32 }
  0x58   : > { %1442 = vmatprep.mubr.msk.f32.mxu0 %vm350_vm1, %v269_v33 }
  0x5b   : > { %1443 = vmatmul.mubr.msk.f32.gmra.mxu0 %vm350_vm1, %v270_v34 }
  0x5c   : > { %1445 = vmatprep.mubr.msk.f32.mxu0 %vm350_vm1, %v271_v35 }
  0x5f   : > { %1446 = vmatmul.mubr.msk.f32.gmra.mxu0 %vm350_vm1, %v272_v36 }
  0xe3   : > { %v1806_v37 = vpop.f32.mrf.mxu0 }
  0xe4   : > { %v678_v9 = vsel %vm2613_vm2, %v1806_v37, inf }
  0xe5   : > { %v1808_v38 = vpop.f32.mrf.mxu0 }
  0xe6   : > { %v677_v3 = vsel %vm2613_vm2, %v1808_v38, inf }
  0xe7   : > { %v1810_v39 = vpop.f32.mrf.mxu0 }
  0xe8   : > { %v680_v10 = vsel %vm2613_vm2, %v1810_v39, inf }
  0xe9   : > { %v1812_v40 = vpop.f32.mrf.mxu0 }
  0xea   : > { %v679_v11 = vsel %vm2613_vm2, %v1812_v40, inf }
  0xeb   : > { %v1814_v41 = vpop.f32.mrf.mxu0 }
  0xec   : > { %v683_v5 = vsel %vm2613_vm2, %v1814_v41, inf }
  0xed   : > { %v1816_v42 = vpop.f32.mrf.mxu0  ;;  %v684_v18 = vmin.f32 %v678_v9, %v683_v5 }
  0xee   : > { %v681_v0 = vsel %vm2613_vm2, %v1816_v42, inf }
  0xef   : > { %v1818_v43 = vpop.f32.mrf.mxu0  ;;  %v682_v12 = vmin.f32 %v677_v3, %v681_v0 }
  0xf0   : > { %v687_v6 = vsel %vm2613_vm2, %v1818_v43, inf }
  0xf1   : > { %v1820_v44 = vpop.f32.mrf.mxu0  ;;  %v688_v19 = vmin.f32 %v680_v10, %v687_v6 }
  0xf2   : > { %v685_v7 = vsel %vm2613_vm2, %v1820_v44, inf }
  0xf3   : > { %v1822_v45 = vpop.f32.mrf.mxu0  ;;  %v686_v20 = vmin.f32 %v679_v11, %v685_v7 }
  0xf4   : > { %v691_v14 = vsel %vm2613_vm2, %v1822_v45, inf }
  0xf5   : > { %v1824_v46 = vpop.f32.mrf.mxu0  ;;  %v692_v27 = vmin.f32 %v684_v18, %v691_v14 }
  0xf6   : > { %v689_v8 = vsel %vm2613_vm2, %v1824_v46, inf }
  0xf7   : > { %v1826_v47 = vpop.f32.mrf.mxu0  ;;  %v690_v21 = vmin.f32 %v682_v12, %v689_v8 }
  0xf8   : > { %v695_v15 = vsel %vm2613_vm2, %v1826_v47, inf }
  0xf9   : > { %v1828_v48 = vpop.f32.mrf.mxu0  ;;  %v696_v28 = vmin.f32 %v688_v19, %v695_v15 }
  0xfa   : > { %v693_v16 = vsel %vm2613_vm2, %v1828_v48, inf }
  0xfb   : > { %v1830_v49 = vpop.f32.mrf.mxu0  ;;  %v694_v29 = vmin.f32 %v686_v20, %v693_v16 }
  0xfc   : > { %v699_v23 = vsel %vm2613_vm2, %v1830_v49, inf }
  0xfd   : > { %v1832_v50 = vpop.f32.mrf.mxu0  ;;  %v700_v36 = vmin.f32 %v692_v27, %v699_v23 }
  0xfe   : > { %v697_v17 = vsel %vm2613_vm2, %v1832_v50, inf }
  0xff   : > { %v1834_v51 = vpop.f32.mrf.mxu0  ;;  %v698_v30 = vmin.f32 %v690_v21, %v697_v17 }
 0x100   : > { %v703_v24 = vsel %vm2613_vm2, %v1834_v51, inf }
 0x101   : > { %v1836_v52 = vpop.f32.mrf.mxu0  ;;  %v704_v55 = vmin.f32 %v696_v28, %v703_v24 }
 0x102   : > { %v701_v25 = vsel %vm2613_vm2, %v1836_v52, inf }
 0x103   : > { %v1838_v53 = vpop.f32.mrf.mxu0  ;;  %v702_v58 = vmin.f32 %v694_v29, %v701_v25  ;;  %v1935_v25 = vadd.s32 24, %v1853_v61 }
 0x104   : > { %v707_v32 = vsel %vm2613_vm2, %v1838_v53, inf }
 0x105   : > { %v1840_v54 = vpop.f32.mrf.mxu0  ;;  %v708_v9 = vmin.f32 %v700_v36, %v707_v32  ;;  %v2024_v36 = vadd.s32 176, %v1853_v61 }
 0x106   : > { %v705_v26 = vsel %vm2613_vm2, %v1840_v54, inf }
 0x107   : > { %v1845_v56 = vpop.f32.mrf.mxu0  ;;  %v706_v0 = vmin.f32 %v698_v30, %v705_v26  ;;  %v1938_v26 = vadd.s32 16, %v1853_v61 }
 0x108   : > { %v711_v33 = vsel %vm2613_vm2, %v1845_v56, inf }
 0x109   : > { %v1847_v57 = vpop.f32.mrf.mxu0  ;;  %v712_v10 = vmin.f32 %v704_v55, %v711_v33 }
 0x10a   : > { %v709_v34 = vsel %vm2613_vm2, %v1847_v57, inf }
 0x10b   : > { %v1849_v59 = vpop.f32.mrf.mxu0  ;;  %v710_v11 = vmin.f32 %v702_v58, %v709_v34 }
 0x10c   : > { %v715_v5 = vsel %vm2613_vm2, %v1849_v59, inf }
 0x10d   : > { %v1851_v60 = vpop.f32.mrf.mxu0  ;;  %v716_v19 = vmin.f32 %v708_v9, %v715_v5  ;;  %v1956_v9 = vadd.s32 32, %v1853_v61  ;;  %v2039_v5 = vadd.s32 232, %v1853_v61 }
 0x10e   : > { %v713_v35 = vsel %vm2613_vm2, %v1851_v60, inf }
 0x10f   : > { %v1855_v62 = vpop.f32.mrf.mxu0  ;;  %v714_v12 = vmin.f32 %v706_v0, %v713_v35 }
 0x110   : > { %v719_v6 = vsel %vm2613_vm2, %v1855_v62, inf }
 0x111   : > { %v1857_v63 = vpop.f32.mrf.mxu0  ;;  %v720_v20 = vmin.f32 %v712_v10, %v719_v6  ;;  %v1959_v10 = vadd.s32 56, %v1853_v61 }
 0x112   : > { %v717_v7 = vsel %vm2613_vm2, %v1857_v63, inf }
 0x113   : > { %v1866_v4 = vpop.f32.mrf.mxu0  ;;  %v718_v21 = vmin.f32 %v710_v11, %v717_v7  ;;  %2616 = vst [vmem:[#allocation5_spill] sm:$0xff] %v1959_v10  ;;  %v2036_v7 = vadd.s32 208, %v1853_v61 }
 0x114   : > { %v723_v15 = vsel %vm2613_vm2, %v1866_v4, inf }
 0x115   : > { %v1882_v13 = vpop.f32.mrf.mxu0  ;;  %v724_v29 = vmin.f32 %v716_v19, %v723_v15  ;;  %v1962_v15 = vadd.s32 48, %v1853_v61  ;;  %v1974_v19 = vadd.s32 80, %v1853_v61 }
 0x116   : > { %v721_v8 = vsel %vm2613_vm2, %v1882_v13, inf }
 0x117   : > { %v1892_v22 = vpop.f32.mrf.mxu0  ;;  %v722_v23 = vmin.f32 %v714_v12, %v721_v8  ;;  %v1953_v8 = vadd.s32 40, %v1853_v61  ;;  %2617 = vst [vmem:[#allocation6_spill] sm:$0xff] %v1962_v15  ;;  %2621 = vst [vmem:[#allocation10_spill] sm:$0xff] %v1974_v19  ;;  %v340_v19 = vcvt.s32.f32 %v2024_v36  ;;  %v344_v15 = vcvt.s32.f32 %v2036_v7 }
 0x118   : > { %v727_v16 = vsel %vm2613_vm2, %v1892_v22, inf  ;;  %v2680_v36 = vcvt.s32.f32 %v2039_v5 }
 0x119   : > { %v1902_v31 = vpop.f32.mrf.mxu0  ;;  %v728_v30 = vmin.f32 %v720_v20, %v727_v16  ;;  %v1965_v16 = vadd.s32 72, %v1853_v61  ;;  %v1977_v20 = vadd.s32 104, %v1853_v61 }
 0x11a   : > { %v725_v17 = vsel %vm2613_vm2, %v1902_v31, inf }
 0x11b   : > { %v1912_v3 = vpop.f32.mrf.mxu0  ;;  %v726_v32 = vmin.f32 %v718_v21, %v725_v17  ;;  %2618 = vst [vmem:[#allocation7_spill] sm:$0xff] %v1965_v16  ;;  %v1968_v17 = vadd.s32 64, %v1853_v61  ;;  %2622 = vst [vmem:[#allocation11_spill] sm:$0xff] %v1977_v20  ;;  %v1980_v21 = vadd.s32 96, %v1853_v61  ;;  %v2630_v20 = vcvt.s32.f32 %v1938_v26 }
 0x11c   : > { %v731_v27 = vsel %vm2613_vm2, %v1912_v3, inf  ;;  %v2633_v26 = vcvt.s32.f32 %v1953_v8 }
 0x11d   : > { %v1922_v14 = vpop.f32.mrf.mxu0  ;;  %v732_v55 = vmin.f32 %v724_v29, %v731_v27  ;;  %2619 = vst [vmem:[#allocation8_spill] sm:$0xff] %v1968_v17  ;;  %2623 = vst [vmem:[#allocation12_spill] sm:$0xff] %v1980_v21  ;;  %v1983_v27 = vadd.s32 120, %v1853_v61  ;;  %v1989_v29 = vadd.s32 136, %v1853_v61 }
 0x11e   : > { %v729_v18 = vsel %vm2613_vm2, %v1922_v14, inf }
 0x11f   : > { %v1932_v24 = vpop.f32.mrf.mxu0  ;;  %v730_v33 = vmin.f32 %v722_v23, %v729_v18  ;;  %v1971_v18 = vadd.s32 88, %v1853_v61  ;;  %2624 = vst [vmem:[#allocation13_spill] sm:$0xff] %v1983_v27  ;;  %2626 = vst [vmem:[#allocation15_spill] sm:$0xff] %v1989_v29  ;;  %v2042_v29 = vadd.s32 224, %v1853_v61  ;;  %v2048_v27 = vadd.s32 248, %v1853_v61 }
 0x120   : > { %v735_v28 = vsel %vm2613_vm2, %v1932_v24, inf }
 0x121   : > { %v1944_v34 = vpop.f32.mrf.mxu0  ;;  %v736_v58 = vmin.f32 %v728_v30, %v735_v28  ;;  %v737_v11 = vmin.f32 %v730_v33, %v732_v55  ;;  %2620 = vst [vmem:[#allocation9_spill] sm:$0xff] %v1971_v18  ;;  %v1986_v28 = vadd.s32 112, %v1853_v61  ;;  %v1992_v30 = vadd.s32 128, %v1853_v61 }
 0x122   : > { %v733_v35 = vsel %vm2613_vm2, %v1944_v34, inf  ;;  %v2030_v33 = vadd.s32 192, %v1853_v61 }
 0x123   : > { %v734_v0 = vmin.f32 %v726_v32, %v733_v35  ;;  %2625 = vst [vmem:[#allocation14_spill] sm:$0xff] %v1986_v28  ;;  %2627 = vst [vmem:[#allocation16_spill] sm:$0xff] %v1992_v30  ;;  %v2033_v35 = vadd.s32 216, %v1853_v61  ;;  %v2045_v30 = vadd.s32 240, %v1853_v61 }
 0x124   : > { %v342_v17 = vcvt.s32.f32 %v2030_v33  ;;  %v2638_v8 = vld [vmem:[#allocation8_spill] sm:$0xff] }
 0x125   : > { %v738_v12 = vmin.f32 %v734_v0, %v736_v58  ;;  %v2009_v0 = vadd.s32 152, %v1853_v61  ;;  %v2027_v58 = vadd.s32 200, %v1853_v61  ;;  %v345_v10 = vcvt.s32.f32 %v2033_v35 }
 0x126   : > { %v2681_v7 = vcvt.s32.f32 %v2045_v30 }
 0x127   : > { %v739_v23 = vmin.f32 %v737_v11, %v738_v12  ;;  %v2012_v12 = vadd.s32 144, %v1853_v61  ;;  %v343_v16 = vcvt.s32.f32 %v2027_v58 }
 0x129   : > { %v740_v55 = vrot.slane %v739_v23, 4 }
 0x12b   : > { %v741_v32 = vmin.f32 %v739_v23, %v740_v55  ;;  %v2018_v23 = vadd.s32 160, %v1853_v61  ;;  %v2021_v55 = vadd.s32 184, %v1853_v61 }
 0x12d   : > { %v742_v6 = vrot.slane %v741_v32, 2 }
 0x12f   : > { %v743_v11 = vmin.f32 %v741_v32, %v742_v6  ;;  %v2629_v32 = vcvt.s32.f32 %v1862_v2  ;;  %v2632_v2 = vcvt.s32.f32 %v1956_v9  ;;  %v2636_v9 = vld [vmem:[#allocation5_spill] sm:$0xff] }
 0x131   : > { %v744_v18 = vrot.slane %v743_v11, 1 }
 0x133   : > { %v2060_v28 = vmin.f32 %v743_v11, %v744_v18  ;;  %v2628_v18 = vcvt.s32.f32 %v1853_v61  ;;  %v2631_v61 = vcvt.s32.f32 %v1935_v25  ;;  %v2634_v25 = vld [vmem:[#allocation6_spill] sm:$0xff] }
 0x135   : > { %vm746_vm3 = vcmp.le.f32.partialorder %v1808_v38, %v2060_v28  ;;  %vm747_vm4 = vcmp.le.f32.partialorder %v1806_v37, %v2060_v28  ;;  %vm748_vm5 = vcmp.le.f32.partialorder %v1812_v40, %v2060_v28  ;;  %vm749_vm6 = vcmp.le.f32.partialorder %v1810_v39, %v2060_v28 }
 0x136   : > { %vm750_vm7 = vcmp.le.f32.partialorder %v1816_v42, %v2060_v28  ;;  %vm751_vm8 = vcmp.le.f32.partialorder %v1814_v41, %v2060_v28  ;;  %vm752_vm9 = vcmp.le.f32.partialorder %v1820_v44, %v2060_v28  ;;  %vm753_vm10 = vcmp.le.f32.partialorder %v1818_v43, %v2060_v28 }
 0x137   : > { %vm754_vm11 = vcmp.le.f32.partialorder %v1824_v46, %v2060_v28  ;;  %vm771_vm14 = vcmp.le.f32.partialorder %v1866_v4, %v2060_v28  ;;  %vm772_vm15 = vcmp.le.f32.partialorder %v1902_v31, %v2060_v28  ;;  %vm773_vm0 = vcmp.le.f32.partialorder %v1892_v22, %v2060_v28 }
 0x138   : > { %vm774_vm1 = vcmp.le.f32.partialorder %v1922_v14, %v2060_v28  ;;  %vm775_vm2 = vcmp.le.f32.partialorder %v1912_v3, %v2060_v28  ;;  %vm776_vm12 = vcmp.le.f32.partialorder %v1944_v34, %v2060_v28  ;;  %vm777_vm13 = vcmp.le.f32.partialorder %v1932_v24, %v2060_v28 }
 0x139   : > { %v2135_v11 = vsel %vm746_vm3, %v2628_v18, 256.0  ;;  %v2142_v6 = vsel %vm747_vm4, %v2629_v32, 256.0  ;;  %v2149_v21 = vsel %vm748_vm5, %v2630_v20, 256.0  ;;  %v2156_v38 = vsel %vm749_vm6, %v2631_v61, 256.0  ;;  %v2640_v61 = vld [vmem:[#allocation7_spill] sm:$0xff] }
 0x13a   : > { %v2163_v37 = vsel %vm750_vm7, %v2632_v2, 256.0  ;;  %v2170_v40 = vsel %vm751_vm8, %v2633_v26, 256.0  ;;  %v2635_v20 = vcvt.s32.f32 %v2634_v25  ;;  %v2637_v32 = vcvt.s32.f32 %v2636_v9  ;;  %v2643_v26 = vld [vmem:[#allocation10_spill] sm:$0xff] }
 0x13b   : > { %v2639_v18 = vcvt.s32.f32 %v2638_v8  ;;  %v2641_v2 = vcvt.s32.f32 %v2640_v61  ;;  %vm2642_vm3 = vcmp.le.f32.partialorder %v1822_v45, %v2060_v28  ;;  %v2644_v25 = vcvt.s32.f32 %v2643_v26 }
 0x13c   : > { %v2177_v39 = vsel %vm752_vm9, %v2635_v20, 256.0  ;;  %v2184_v42 = vsel %vm753_vm10, %v2637_v32, 256.0  ;;  %vm2645_vm4 = vcmp.le.f32.partialorder %v1828_v48, %v2060_v28  ;;  %v2646_v20 = vld [vmem:[#allocation9_spill] sm:$0xff]  ;;  %vm2648_vm5 = vcmp.le.f32.partialorder %v1826_v47, %v2060_v28  ;;  %v2649_v32 = vld [vmem:[#allocation12_spill] sm:$0xff] }
 0x13d   : > { %v2191_v41 = vsel %vm754_vm11, %v2639_v18, 256.0  ;;  %v2198_v44 = vsel %vm2642_vm3, %v2641_v2, 256.0  ;;  %v2205_v43 = vsel %vm2645_vm4, %v2644_v25, 256.0  ;;  %v2647_v9 = vcvt.s32.f32 %v2646_v20  ;;  %v2652_v18 = vld [vmem:[#allocation11_spill] sm:$0xff]  ;;  %v2655_v2 = vld [vmem:[#allocation14_spill] sm:$0xff]  ;;  %v2658_v25 = vld [vmem:[#allocation13_spill] sm:$0xff] }
 0x13e   : > { %v2650_v8 = vcvt.s32.f32 %v2649_v32  ;;  %vm2651_vm6 = vcmp.le.f32.partialorder %v1832_v50, %v2060_v28  ;;  %v2653_v61 = vcvt.s32.f32 %v2652_v18  ;;  %vm2654_vm7 = vcmp.le.f32.partialorder %v1830_v49, %v2060_v28 }
 0x13f   : > { %v2212_v46 = vsel %vm2648_vm5, %v2647_v9, 256.0  ;;  %v2656_v26 = vcvt.s32.f32 %v2655_v2  ;;  %vm2657_vm8 = vcmp.le.f32.partialorder %v1836_v52, %v2060_v28  ;;  %v2659_v20 = vcvt.s32.f32 %v2658_v25  ;;  %v2661_v9 = vld [vmem:[#allocation16_spill] sm:$0xff] }
 0x140   : > { %v2219_v45 = vsel %vm2651_vm6, %v2650_v8, 256.0  ;;  %v2226_v48 = vsel %vm2654_vm7, %v2653_v61, 256.0  ;;  %vm2660_vm9 = vcmp.le.f32.partialorder %v1834_v51, %v2060_v28  ;;  %v2662_v32 = vcvt.s32.f32 %v2661_v9  ;;  %v2664_v8 = vld [vmem:[#allocation15_spill] sm:$0xff] }
 0x141   : > { %v2233_v47 = vsel %vm2657_vm8, %v2656_v26, 256.0  ;;  %v2240_v50 = vsel %vm2660_vm9, %v2659_v20, 256.0  ;;  %vm2663_vm10 = vcmp.le.f32.partialorder %v1840_v54, %v2060_v28  ;;  %v2665_v18 = vcvt.s32.f32 %v2664_v8 }
 0x142   : > { %v2247_v49 = vsel %vm2663_vm10, %v2662_v32, 256.0  ;;  %vm2666_vm11 = vcmp.le.f32.partialorder %v1838_v53, %v2060_v28  ;;  %v2667_v61 = vcvt.s32.f32 %v2012_v12  ;;  %vm2668_vm3 = vcmp.le.f32.partialorder %v1847_v57, %v2060_v28 }
 0x143   : > { %v2254_v52 = vsel %vm2666_vm11, %v2665_v18, 256.0  ;;  %v2669_v2 = vcvt.s32.f32 %v2009_v0  ;;  %vm2670_vm4 = vcmp.le.f32.partialorder %v1845_v56, %v2060_v28  ;;  %v2671_v26 = vcvt.s32.f32 %v2018_v23 }
 0x144   : > { %v2261_v51 = vsel %vm2668_vm3, %v2667_v61, 256.0  ;;  %vm2672_vm5 = vcmp.le.f32.partialorder %v1851_v60, %v2060_v28  ;;  %v2673_v12 = vcvt.s32.f32 %v2015_v1  ;;  %vm2674_vm6 = vcmp.le.f32.partialorder %v1849_v59, %v2060_v28 }
 0x145   : > { %v2268_v54 = vsel %vm2670_vm4, %v2669_v2, 256.0  ;;  %v2275_v53 = vsel %vm2672_vm5, %v2671_v26, 256.0  ;;  %vm2675_vm7 = vcmp.le.f32.partialorder %v1857_v63, %v2060_v28  ;;  %v2676_v0 = vcvt.s32.f32 %v2021_v55 }
 0x146   : > { %v2282_v57 = vsel %vm2674_vm6, %v2673_v12, 256.0  ;;  %v2289_v56 = vsel %vm2675_vm7, %v340_v19, 256.0  ;;  %vm2677_vm8 = vcmp.le.f32.partialorder %v1855_v62, %v2060_v28  ;;  %vm2678_vm9 = vcmp.le.f32.partialorder %v1882_v13, %v2060_v28 }
 0x147   : > { %v2296_v60 = vsel %vm2677_vm8, %v2676_v0, 256.0  ;;  %v2303_v1 = vsel %vm2678_vm9, %v342_v17, 256.0  ;;  %v2310_v59 = vsel %vm771_vm14, %v343_v16, 256.0  ;;  %v2317_v62 = vsel %vm772_vm15, %v344_v15, 256.0 }
 0x148   : > { %v2324_v63 = vsel %vm773_vm0, %v345_v10, 256.0  ;;  %v2679_v13 = vcvt.s32.f32 %v2042_v29  ;;  %v2338_v31 = vsel %vm775_vm2, %v2680_v36, 256.0  ;;  %v2345_v22 = vsel %vm776_vm12, %v2681_v7, 256.0 }
 0x149   : > { %v2682_v10 = vcvt.s32.f32 %v2048_v27  ;;  %vm2683_vm14 = vcmask 130048  }
 0x14a   : > { %v2331_v4 = vsel %vm774_vm1, %v2679_v13, 256.0  ;;  %v810_v5 = vsel %vm2683_vm14, %v2135_v11, inf  ;;  %vm2684_vm2 = vmmov %vm2683_vm14 }
 0x14b   : > { %v2352_v14 = vsel %vm777_vm13, %v2682_v10, 256.0  ;;  %v811_v3 = vsel %vm2684_vm2, %v2142_v6, inf  ;;  %vm2685_vm15 = vmmov %vm2684_vm2 }
 0x14c   : > { %v812_v15 = vsel %vm2685_vm15, %v2149_v21, inf  ;;  %vm2686_vm0 = vmmov %vm2684_vm2 }
 0x14d   : > { %v813_v34 = vsel %vm2686_vm0, %v2156_v38, inf  ;;  %vm2687_vm12 = vmmov %vm2686_vm0  ;;  %v844_v10 = vsel %vm2686_vm0, %v2268_v54, inf }
 0x14e   : > { %v814_v16 = vsel %vm2687_vm12, %v2163_v37, inf  ;;  %vm2688_vm1 = vmmov %vm2686_vm0 }
 0x14f   : > { %v816_v24 = vsel %vm2688_vm1, %v2170_v40, inf  ;;  %vm2689_vm13 = vmmov %vm2686_vm0  ;;  %v815_v27 = vmin.f32 %v810_v5, %v814_v16 }
 0x150   : > { %v818_v17 = vsel %vm2689_vm13, %v2177_v39, inf  ;;  %vm2690_vm10 = vmmov %vm2686_vm0  ;;  %v817_v28 = vmin.f32 %v811_v3, %v816_v24 }
 0x151   : > { %v820_v19 = vsel %vm2690_vm10, %v2184_v42, inf  ;;  %v819_v29 = vmin.f32 %v812_v15, %v818_v17  ;;  %vm2691_vm11 = vmmov %vm2686_vm0 }
 0x152   : > { %v821_v30 = vmin.f32 %v813_v34, %v820_v19  ;;  %v822_v33 = vsel %vm2691_vm11, %v2191_v41, inf  ;;  %vm2692_vm3 = vmmov %vm2686_vm0 }
 0x153   : > { %v824_v35 = vsel %vm2692_vm3, %v2198_v44, inf  ;;  %vm2693_vm4 = vmmov %vm2686_vm0  ;;  %v823_v55 = vmin.f32 %v815_v27, %v822_v33 }
 0x154   : > { %v826_v58 = vsel %vm2693_vm4, %v2205_v43, inf  ;;  %vm2694_vm5 = vmmov %vm2686_vm0  ;;  %v825_v25 = vmin.f32 %v817_v28, %v824_v35 }
 0x155   : > { %v828_v23 = vsel %vm2694_vm5, %v2212_v46, inf  ;;  %v827_v20 = vmin.f32 %v819_v29, %v826_v58  ;;  %vm2695_vm6 = vmmov %vm2686_vm0 }
 0x156   : > { %v829_v9 = vmin.f32 %v821_v30, %v828_v23  ;;  %v830_v32 = vsel %vm2695_vm6, %v2219_v45, inf  ;;  %vm2696_vm7 = vmmov %vm2686_vm0 }
 0x157   : > { %v832_v8 = vsel %vm2696_vm7, %v2226_v48, inf  ;;  %vm2697_vm8 = vmmov %vm2686_vm0  ;;  %v831_v2 = vmin.f32 %v823_v55, %v830_v32 }
 0x158   : > { %v834_v18 = vsel %vm2697_vm8, %v2233_v47, inf  ;;  %vm2698_vm9 = vmmov %vm2686_vm0  ;;  %v833_v26 = vmin.f32 %v825_v25, %v832_v8 }
 0x159   : > { %v836_v61 = vsel %vm2698_vm9, %v2240_v50, inf  ;;  %v835_v12 = vmin.f32 %v827_v20, %v834_v18  ;;  %vm2699_vm14 = vmmov %vm2686_vm0 }
 0x15a   : > { %v837_v0 = vmin.f32 %v829_v9, %v836_v61  ;;  %v838_v13 = vsel %vm2699_vm14, %v2247_v49, inf  ;;  %vm2700_vm2 = vmmov %vm2686_vm0 }
 0x15b   : > { %v840_v36 = vsel %vm2700_vm2, %v2254_v52, inf  ;;  %vm2701_vm15 = vmmov %vm2686_vm0  ;;  %v839_v5 = vmin.f32 %v831_v2, %v838_v13 }
 0x15c   : > { %v842_v7 = vsel %vm2701_vm15, %v2261_v51, inf  ;;  %v841_v3 = vmin.f32 %v833_v26, %v840_v36  ;;  %v845_v34 = vmin.f32 %v837_v0, %v844_v10  ;;  %vm2702_vm12 = vmmov %vm2686_vm0 }
 0x15d   : > { %v843_v15 = vmin.f32 %v835_v12, %v842_v7  ;;  %v846_v16 = vsel %vm2702_vm12, %v2275_v53, inf  ;;  %vm2703_vm1 = vmmov %vm2686_vm0 }
 0x15e   : > { %v848_v24 = vsel %vm2703_vm1, %v2282_v57, inf  ;;  %vm2704_vm13 = vmmov %vm2686_vm0  ;;  %v847_v27 = vmin.f32 %v839_v5, %v846_v16 }
 0x15f   : > { %v850_v17 = vsel %vm2704_vm13, %v2289_v56, inf  ;;  %vm2705_vm10 = vmmov %vm2686_vm0  ;;  %v849_v28 = vmin.f32 %v841_v3, %v848_v24  ;;  %v2714_v24 = vmov 1.0  }
 0x160   : > { %v852_v19 = vsel %vm2705_vm10, %v2296_v60, inf  ;;  %v851_v29 = vmin.f32 %v843_v15, %v850_v17  ;;  %vm2706_vm11 = vmmov %vm2686_vm0 }
 0x161   : > { %v853_v30 = vmin.f32 %v845_v34, %v852_v19  ;;  %v854_v33 = vsel %vm2706_vm11, %v2303_v1, inf  ;;  %vm2707_vm3 = vmmov %vm2686_vm0 }
 0x162   : > { %v856_v35 = vsel %vm2707_vm3, %v2310_v59, inf  ;;  %vm2708_vm4 = vmmov %vm2686_vm0  ;;  %v855_v55 = vmin.f32 %v847_v27, %v854_v33 }
 0x163   : > { %v858_v58 = vsel %vm2708_vm4, %v2317_v62, inf  ;;  %vm2709_vm5 = vmmov %vm2686_vm0  ;;  %v857_v25 = vmin.f32 %v849_v28, %v856_v35  ;;  %vm1061_vm4 = vcmask 122880  }
 0x164   : > { %v860_v23 = vsel %vm2709_vm5, %v2324_v63, inf  ;;  %v859_v20 = vmin.f32 %v851_v29, %v858_v58  ;;  %vm2710_vm6 = vmmov %vm2686_vm0 }
 0x165   : > { %v861_v9 = vmin.f32 %v853_v30, %v860_v23  ;;  %v862_v32 = vsel %vm2710_vm6, %v2331_v4, inf  ;;  %vm2711_vm7 = vmmov %vm2686_vm0 }
 0x166   : > { %v864_v8 = vsel %vm2711_vm7, %v2338_v31, inf  ;;  %vm2712_vm8 = vmmov %vm2686_vm0  ;;  %v863_v2 = vmin.f32 %v855_v55, %v862_v32 }
 0x167   : > { %v866_v18 = vsel %vm2712_vm8, %v2345_v22, inf  ;;  %vm2713_vm9 = vmmov %vm2686_vm0  ;;  %v865_v26 = vmin.f32 %v857_v25, %v864_v8 }
 0x168   : > { %v868_v61 = vsel %vm2713_vm9, %v2352_v14, inf  ;;  %v867_v12 = vmin.f32 %v859_v20, %v866_v18 }
 0x169   : > { %v869_v0 = vmin.f32 %v861_v9, %v868_v61  ;;  %v870_v13 = vmin.f32 %v863_v2, %v865_v26 }
 0x16b   : > { %v871_v36 = vmin.f32 %v867_v12, %v869_v0 }
 0x16d   : > { %v872_v7 = vmin.f32 %v870_v13, %v871_v36 }
 0x16f   : > { %v873_v10 = vrot.slane %v872_v7, 4 }
 0x171   : > { %v874_v5 = vmin.f32 %v872_v7, %v873_v10 }
 0x173   : > { %v875_v3 = vrot.slane %v874_v5, 2 }
 0x175   : > { %v876_v15 = vmin.f32 %v874_v5, %v875_v3 }
 0x177   : > { %v877_v34 = vrot.slane %v876_v15, 1 }
 0x179   : > { %v2418_v16 = vmin.f32 %v876_v15, %v877_v34 }
 0x17b   : > { %vm910_vm14 = vcmp.eq.f32.partialorder %v2352_v14, %v2418_v16  ;;  %vm894_vm2 = vcmp.eq.f32.partialorder %v2240_v50, %v2418_v16  ;;  %vm909_vm15 = vcmp.eq.f32.partialorder %v2345_v22, %v2418_v16  ;;  %vm893_vm0 = vcmp.eq.f32.partialorder %v2233_v47, %v2418_v16 }
 0x17c   : > { %1346 = vmatprep.subr.msk.mxu1 %vm910_vm14, %v2714_v24  ;;  %vm908_vm12 = vcmp.eq.f32.partialorder %v2338_v31, %v2418_v16  ;;  %vm892_vm1 = vcmp.eq.f32.partialorder %v2226_v48, %v2418_v16  ;;  %vm907_vm13 = vcmp.eq.f32.partialorder %v2331_v4, %v2418_v16  ;;  %vm891_vm10 = vcmp.eq.f32.partialorder %v2219_v45, %v2418_v16 }
 0x17d   : > { %1347 = vmatpush3.msk.msra.mxu1 %vm894_vm2, %v2714_v24  ;;  %vm906_vm11 = vcmp.eq.f32.partialorder %v2324_v63, %v2418_v16  ;;  %v1448_v47 = vtrunc.f32 %v2418_v16  ;;  %vm890_vm3 = vcmp.eq.f32.partialorder %v2212_v46, %v2418_v16  ;;  %vm905_vm5 = vcmp.eq.f32.partialorder %v2317_v62, %v2418_v16 }
 0x17e   : > { %1348 = vmatprep.subr.msk.mxu1 %vm909_vm15, %v2714_v24  ;;  %vm889_vm6 = vcmp.eq.f32.partialorder %v2205_v43, %v2418_v16  ;;  %vm904_vm7 = vcmp.eq.f32.partialorder %v2310_v59, %v2418_v16  ;;  %vm888_vm8 = vcmp.eq.f32.partialorder %v2198_v44, %v2418_v16  ;;  %vm903_vm9 = vcmp.eq.f32.partialorder %v2303_v1, %v2418_v16 }
 0x17f   : > { %1349 = vmatpush3.msk.msra.mxu1 %vm893_vm0, %v2714_v24  ;;  %v1449_v48 = vcvt.f32.s32 %v1448_v47  ;;  %vm887_vm14 = vcmp.eq.f32.partialorder %v2191_v41, %v2418_v16  ;;  %vm902_vm2 = vcmp.eq.f32.partialorder %v2296_v60, %v2418_v16  ;;  %vm886_vm15 = vcmp.eq.f32.partialorder %v2184_v42, %v2418_v16 }
 0x180   : > { %1350 = vmatprep.subr.msk.mxu1 %vm908_vm12, %v2714_v24  ;;  %vm901_vm0 = vcmp.eq.f32.partialorder %v2289_v56, %v2418_v16  ;;  %vm885_vm12 = vcmp.eq.f32.partialorder %v2177_v39, %v2418_v16  ;;  %v279_v39 = vld [vmem:[%s2596_s2 + $0x30] sm:$0xff] }
 0x181   : > { %1351 = vmatpush3.msk.msra.mxu1 %vm892_vm1, %v2714_v24  ;;  %1062 = vst.msk [vmem:[%s2462_s29] sm:$0x1] %vm1061_vm4, %v1449_v48  ;;  %vm900_vm1 = vcmp.eq.f32.partialorder %v2282_v57, %v2418_v16  ;;  %vm882_vm4 = vcmp.eq.f32.partialorder %v2156_v38, %v2418_v16  ;;  %v273_v38 = vld [vmem:[%s2596_s2] sm:$0xff] }
 0x182   : > { %1352 = vmatprep.subr.msk.mxu1 %vm907_vm13, %v2714_v24  ;;  %vm884_vm13 = vcmp.eq.f32.partialorder %v2170_v40, %v2418_v16  ;;  %v280_v40 = vld [vmem:[%s2596_s2 + $0x38] sm:$0xff] }
 0x183   : > { %1353 = vmatpush3.msk.msra.mxu1 %vm891_vm10, %v2714_v24  ;;  %vm899_vm10 = vcmp.eq.f32.partialorder %v2275_v53, %v2418_v16 }
 0x184   : > { %1354 = vmatprep.subr.msk.mxu1 %vm906_vm11, %v2714_v24  ;;  %vm883_vm11 = vcmp.eq.f32.partialorder %v2163_v37, %v2418_v16  ;;  %v278_v37 = vld [vmem:[%s2596_s2 + $0x28] sm:$0xff] }
 0x185   : > { %1355 = vmatpush3.msk.msra.mxu1 %vm890_vm3, %v2714_v24  ;;  %vm898_vm3 = vcmp.eq.f32.partialorder %v2268_v54, %v2418_v16 }
 0x186   : > { %1356 = vmatprep.subr.msk.mxu1 %vm905_vm5, %v2714_v24  ;;  %vm897_vm5 = vcmp.eq.f32.partialorder %v2261_v51, %v2418_v16 }
 0x187   : > { %1357 = vmatpush3.msk.msra.mxu1 %vm889_vm6, %v2714_v24  ;;  %vm881_vm6 = vcmp.eq.f32.partialorder %v2149_v21, %v2418_v16  ;;  %v276_v21 = vld [vmem:[%s2596_s2 + $0x18] sm:$0xff] }
 0x188   : > { %1358 = vmatprep.subr.msk.mxu1 %vm904_vm7, %v2714_v24  ;;  %vm896_vm7 = vcmp.eq.f32.partialorder %v2254_v52, %v2418_v16 }
 0x189   : > { %1359 = vmatpush3.msk.msra.mxu1 %vm888_vm8, %v2714_v24  ;;  %vm880_vm8 = vcmp.eq.f32.partialorder %v2142_v6, %v2418_v16  ;;  %v275_v6 = vld [vmem:[%s2596_s2 + $0x10] sm:$0xff] }
 0x18a   : > { %1360 = vmatprep.subr.msk.mxu1 %vm903_vm9, %v2714_v24  ;;  %vm895_vm9 = vcmp.eq.f32.partialorder %v2247_v49, %v2418_v16 }
 0x18b   : > { %1361 = vmatpush3.msk.msra.mxu1 %vm887_vm14, %v2714_v24  ;;  %vm879_vm14 = vcmp.eq.f32.partialorder %v2135_v11, %v2418_v16  ;;  %v277_v11 = vld [vmem:[%s2596_s2 + $0x20] sm:$0xff] }
 0x18c   : > { %1362 = vmatprep.subr.msk.mxu1 %vm902_vm2, %v2714_v24 }
 0x18d   : > { %1363 = vmatpush3.msk.msra.mxu1 %vm886_vm15, %v2714_v24 }
 0x18e   : > { %1364 = vmatprep.subr.msk.mxu1 %vm901_vm0, %v2714_v24 }
 0x18f   : > { %1365 = vmatpush3.msk.msra.mxu1 %vm885_vm12, %v2714_v24 }
 0x190   : > { %1366 = vmatprep.subr.msk.mxu1 %vm900_vm1, %v2714_v24 }
 0x191   : > { %1367 = vmatpush3.msk.msra.mxu1 %vm884_vm13, %v2714_v24 }
 0x192   : > { %1368 = vmatprep.subr.msk.mxu1 %vm899_vm10, %v2714_v24 }
 0x193   : > { %1369 = vmatpush3.msk.msra.mxu1 %vm883_vm11, %v2714_v24 }
 0x194   : > { %1370 = vmatprep.subr.msk.mxu1 %vm898_vm3, %v2714_v24 }
 0x195   : > { %1371 = vmatpush3.msk.msra.mxu1 %vm882_vm4, %v2714_v24 }
 0x196   : > { %1372 = vmatprep.subr.msk.mxu1 %vm897_vm5, %v2714_v24 }
 0x197   : > { %1373 = vmatpush3.msk.msra.mxu1 %vm881_vm6, %v2714_v24 }
 0x198   : > { %1374 = vmatprep.subr.msk.mxu1 %vm896_vm7, %v2714_v24 }
 0x199   : > { %1375 = vmatpush3.msk.msra.mxu1 %vm880_vm8, %v2714_v24 }
 0x19a   : > { %1376 = vmatprep.subr.msk.mxu1 %vm895_vm9, %v2714_v24 }
 0x19b   : > { %1377 = vmatpush3.msk.msra.mxu1 %vm879_vm14, %v2714_v24 }
 0x19c   : > { %1040 = vmatmul.mubr.f32.vlgmr.msra.gmra.mxu1 %v273_v38 }
 0x19d   : > { %1044 = vmatprep.mubr.f32.mxu1 %v276_v21 }
 0x1a0   : > { %1045 = vmatmul.mubr.f32.gmra.mxu1 %v275_v6 }
 0x1a1   : > { %1049 = vmatprep.mubr.f32.mxu1 %v278_v37 }
 0x1a4   : > { %1050 = vmatmul.mubr.f32.gmra.mxu1 %v277_v11 }
 0x1a5   : > { %1054 = vmatprep.mubr.f32.mxu1 %v280_v40 }
 0x1a8   : > { %1055 = vmatmul.mubr.f32.gmra.mxu1 %v279_v39 }
 0x1a9   : > { %1519 = shalt.err (!%p1516_p5)
}
 0x1aa   : > { %s1520_s18 = scalar_lea.hbm %s1090_s11, 16  ;;  %s1524_s30 = scalar_lea.hbm %s2598_s4, 32 }
 0x1ab   : > { %p1521_p6 = scmp.ne.s32.totalorder %s1090_s11, %s1520_s18  ;;  %p1525_p10 = scmp.lt.s32.totalorder %s1090_s11, %s2598_s4 }
 0x1ac   : > { %p1526_p11 = scmp.lt.s32.totalorder %s1524_s30, %s1520_s18 }
 0x1ad   : > { %p1522_p7 = pnand %p1521_p6, %p1651_p4 }
 0x1ae   : > { %p1527_p12 = por %p1526_p11, %p1525_p10 }
 0x1af   : > { %p1523_p9 = pneg %p1522_p7 }
 0x1b1   : > { %p1528_p13 = pnand %p1527_p12, %p1523_p9 }
 0x1b3   : > { %1531 = shalt.err (!%p1528_p13)
}
 0x1b4   : > { %1450 = dma.vmem_to_hbm [thread:$0]  (%p1651_p4), %s1093_s12, 16, %s1090_s11, %s1076_s13   ;;  %vm2715_vm2 = vcmask 130048  }
 0x1b5   : > { %s240_s14 = scalar_lea.vmem %s2597_s3, %s1307_s6  ;;  %vm2716_vm15 = vmmov %vm2715_vm2 }
 0x1b6   : > { %vm2717_vm0 = vmmov %vm2715_vm2 }
 0x1b7   : > { %vm2718_vm12 = vmmov %vm2717_vm0 }
 0x25c   : > { %v1378_v42 = vpop.f32.mrf.mxu1 }
 0x25e   : > { %v1379_v41 = vpop.f32.mrf.mxu1 }
 0x25f   : > { %v1380_v44 = vadd.f32 %v1379_v41, %v1378_v42 }
 0x260   : > { %v1381_v43 = vpop.f32.mrf.mxu1 }
 0x261   : > { %1063 = vst.msk [vmem:[%s240_s14] sm:$0xff] %vm2715_vm2, %v1380_v44 }
 0x262   : > { %v1382_v46 = vpop.f32.mrf.mxu1 }
 0x263   : > { %v1383_v45 = vadd.f32 %v1382_v46, %v1381_v43 }
 0x264   : > { %v1384_v50 = vpop.f32.mrf.mxu1 }
 0x265   : > { %1064 = vst.msk [vmem:[%s240_s14 + $0x8] sm:$0xff] %vm2716_vm15, %v1383_v45 }
 0x266   : > { %v1385_v49 = vpop.f32.mrf.mxu1 }
 0x267   : > { %v1386_v52 = vadd.f32 %v1385_v49, %v1384_v50 }
 0x268   : > { %v1387_v51 = vpop.f32.mrf.mxu1 }
 0x269   : > { %1065 = vst.msk [vmem:[%s240_s14 + $0x10] sm:$0xff] %vm2717_vm0, %v1386_v52 }
 0x26a   : > { %v1388_v54 = vpop.f32.mrf.mxu1 }
 0x26b   : > { %v1389_v53 = vadd.f32 %v1388_v54, %v1387_v51 }
 0x26d   : > { %1066 = vst.msk [vmem:[%s240_s14 + $0x18] sm:$0xff] %vm2718_vm12, %v1389_v53 }
 0x26e PF: > { %p1456_p4 = scmp.ge.s32.totalorder %s1582_s20, 2  ;;  %s1115_s25 = sand.u32 1, %s1562_s15  }
 0x26f   : > { %s1116_s5 = scalar_lea.sflag [#allocation3], %s1115_s25 }
 0x270   : > { %p1453_p0 = pnand %p1456_p4, %p1658_p8 }
 0x272   : > { %p1454_p1 = pneg %p1453_p0 }
 0x274   : > { %1557 = dma.done.wait (%p1454_p1), %s1116_s5, 16  }
 0x275   : > { %1559 = vsyncadd (%p1454_p1), %s1116_s5, 4294967280  ;;  %s18_s20 = sadd.s32 1, %s1582_s20   ;;  %s2719_s15 = smov %s1566_s16 }
 0x276   : > { %p15_p2 = scmp.ge.s32.totalorder %s18_s20, 4   ;;  %s2720_s16 = smov %s1570_s17 }
 0x277   : > { %s2721_s17 = smov %s1664_s28  ;;  %s2722_s18 = smov %s1578_s19 }
 0x278   : > { %s2723_s19 = smov %s2725_s23  ;;  %17 = sbr.rel (!%p15_p2) target bundleno = 4 (0x4), region = 79 }
 0x27d   :  { %1120 = vsyncpa [#allocation3], 1 }
 0x27e   :  { %1122 = vsyncpa [#allocation3 + $0x1], 1 }

// kernel: tpu_custom_call.1
= control target key start
LH: loop header
LB: loop body
LE: loop exit
PB: predicated region body
PF: predicated region fallthrough
CT: control target
= control target key end

     0   :  { %10 = vsyncpa [#allocation3], 0  ;;  %s2594_s0 = inlined_call_operand.vmem [shape: f32[2,32,16], index: 0, kind: input, shape index: {}]   ;;  %s2595_s1 = inlined_call_operand.vmem [shape: f32[256,33], index: 1, kind: input, shape index: {}]   ;;  %s2596_s2 = inlined_call_operand.vmem [shape: f32[32,256], index: 2, kind: input, shape index: {}]   ;;  %s2597_s3 = inlined_call_operand.vmem [shape: f32[2,32,16], index: 3, kind: output, shape index: {0}]   ;;  %s2598_s4 = inlined_call_operand.hbm [shape: s32[2,1,16], index: 4, kind: output, shape index: {1}]  }
   0x1   :  { %12 = vsyncpa [#allocation3 + $0x1], 0  ;;  %s1611_s15 = smov 0   ;;  %s1613_s16 = smov 0  }
   0x2   :  { %s1615_s17 = smov 0   ;;  %s1617_s18 = smov 0  }
   0x3   :  { %s1619_s19 = smov 0   ;;  %s1621_s20 = smov 0  }
   0x4 LB: > { %s1198_s21 = sadd.s32 4294967295, %s1582_s20   ;;  %s1199_s22 = sadd.s32 4294967294, %s1582_s20   ;;  %s1582_s20 = sphi %s1621_s20, %s18_s20   ;;  %s1578_s19 = sphi %s1619_s19, %s2723_s19   ;;  %s1574_s18 = sphi %s1617_s18, %s2722_s18   ;;  %s1570_s17 = sphi %s1615_s17, %s2721_s17   ;;  %s1566_s16 = sphi %s1613_s16, %s2720_s16   ;;  %s1562_s15 = sphi %s1611_s15, %s2719_s15  }
   0x5   : > { %s30_s23 = sadd.s32 1, %s1578_s19  ;;  %s137_s24 = sadd.s32 1, %s1570_s17 }
   0x6   : > { %p32_p0 = scmp.ge.s32.totalorder %s30_s23, 2  ;;  %p147_p1 = scmp.ne.s32.totalorder %s1570_s17, %s1566_s16 }
   0x7   : > { %p148_p2 = scmp.eq.s32.totalorder %s1198_s21, 1  ;;  %p153_p3 = scmp.ne.s32.totalorder %s1566_s16, %s1562_s15 }
   0x8   : > { %s2725_s23 = smov (%p32_p0, %s30_s23), 0  ;;  %p154_p5 = scmp.eq.s32.totalorder %s1199_s22, 1 }
   0x9   : > { %p1651_p4 = por %p148_p2, %p147_p1  ;;  %s132_s26 = ssub.s32 %s1578_s19, %s2725_s23 }
   0xa   : > { %p1202_p6 = scmp.ge.s32.totalorder %s1582_s20, 1  ;;  %p135_p7 = scmp.eq.s32.totalorder %s132_s26, 0 }
   0xb   : > { %p1658_p8 = por %p154_p5, %p153_p3  ;;  %p189_p9 = scmp.lt.s32.totalorder %s1582_s20, 3 }
   0xc   : > { %s1664_s28 = scalar_select %p135_p7, %s1570_s17, %s137_s24  }
   0xd   : > { %p190_p10 = pnand %p1202_p6, %p189_p9 }
   0xf   : > { %193 = sbr.rel (%p190_p10) target bundleno = 622 (0x26e), region = 32 }
  0x14   : > { %vm447_vm0 = vcmask 1040384   ;;  %p225_p11 = scmp.lt.s32.totalorder %s1574_s18, 1  ;;  %v241_v0 = vld [vmem:[%s2595_s1] sm:$0xff]  ;;  %vm350_vm1 = vcmask 269312   ;;  %v2599_v1 = vmov 1.0   ;;  %v242_v6 = vld [vmem:[%s2595_s1 + $0x8] sm:$0xff]  ;;  %v285_v58 = vlaneseq }
  0x15   : > { %1390 = vmatprep.subr.msk.mxu0 %vm447_vm0, %v2599_v1  ;;  %1400 = vmatprep.mubr.msk.f32.mxu0 %vm350_vm1, %v241_v0  ;;  %v243_v7 = vld [vmem:[%s2595_s1 + $0x10] sm:$0xff]  ;;  %v244_v8 = vld [vmem:[%s2595_s1 + $0x18] sm:$0xff]  ;;  %v245_v9 = vld [vmem:[%s2595_s1 + $0x20] sm:$0xff]  ;;  %vm2613_vm2 = vcmask 130048   ;;  %s223_s26 = sand.u32 1, %s1566_s16   ;;  %s1304_s8 = sshll.u32 %s1574_s18, 4 }
  0x16   : > { %1391 = vmatpush3.msk.msra.mxu0 %vm447_vm0, %v2599_v1  ;;  %s1674_s5 = scalar_select %p225_p11, %s1574_s18, 1  ;;  %v246_v10 = vld [vmem:[%s2595_s1 + $0x28] sm:$0xff]  ;;  %v247_v11 = vld [vmem:[%s2595_s1 + $0x30] sm:$0xff]  ;;  %v248_v12 = vld [vmem:[%s2595_s1 + $0x38] sm:$0xff]  ;;  %v1853_v61 = vshrl.u32 %v285_v58, 7 }
  0x17   : > { %v249_v13 = vld [vmem:[%s2595_s1 + $0x40] sm:$0xff]  ;;  %v250_v14 = vld [vmem:[%s2595_s1 + $0x48] sm:$0xff]  ;;  %v251_v15 = vld [vmem:[%s2595_s1 + $0x50] sm:$0xff]  ;;  %s2462_s29 = scalar_lea.vmem [#allocation2], %s223_s26  ;;  %s1090_s11 = scalar_lea.hbm %s2598_s4, %s1304_s8 }
  0x18   : > { %s1307_s6 = sshll.u32 %s1674_s5, 5  ;;  %v252_v16 = vld [vmem:[%s2595_s1 + $0x58] sm:$0xff]  ;;  %v253_v17 = vld [vmem:[%s2595_s1 + $0x60] sm:$0xff]  ;;  %v254_v18 = vld [vmem:[%s2595_s1 + $0x68] sm:$0xff]  ;;  %v2015_v1 = vadd.s32 168, %v1853_v61  ;;  %s1092_s12 = sshll.u32 %s2462_s29, 4  ;;  %s1093_s12 = int_to_ptr.vmem [resolvable:$true] %s1092_s12 }
  0x19   : > { %s232_s9 = scalar_lea.vmem %s2594_s0, %s1307_s6  ;;  %v255_v19 = vld [vmem:[%s2595_s1 + $0x70] sm:$0xff]  ;;  %v256_v20 = vld [vmem:[%s2595_s1 + $0x78] sm:$0xff]  ;;  %v257_v21 = vld [vmem:[%s2595_s1 + $0x80] sm:$0xff]  ;;  %s1076_s13 = scalar_lea.sflag [#allocation3], %s223_s26 }
  0x1a   : > { %v284_v2 = vld [vmem:[%s232_s9 + $0x18] sm:$0xff]  ;;  %v283_v3 = vld [vmem:[%s232_s9 + $0x10] sm:$0xff]  ;;  %v282_v4 = vld [vmem:[%s232_s9 + $0x8] sm:$0xff]  ;;  %s1506_s14 = scalar_lea.vmem %s1093_s12, 16  ;;  %s1585_s21 = smov [#allocation2]  }
  0x1b   : > { %1392 = vmatprep.subr.mxu0 %v284_v2  ;;  %v281_v5 = vld [vmem:[%s232_s9] sm:$0xff]  ;;  %v258_v22 = vld [vmem:[%s2595_s1 + $0x88] sm:$0xff]  ;;  %v259_v23 = vld [vmem:[%s2595_s1 + $0x90] sm:$0xff]  ;;  %p1507_p12 = scmp.ne.s32.totalorder %s1093_s12, %s1506_s14  ;;  %s1510_s22 = sshll.u32 %s1585_s21, 4  ;;  %s1511_s22 = int_to_ptr.vmem [resolvable:$false] %s1510_s22 }
  0x1c   : > { %1393 = vmatpush3.msra.mxu0 %v284_v2  ;;  %v260_v24 = vld [vmem:[%s2595_s1 + $0x98] sm:$0xff]  ;;  %v261_v25 = vld [vmem:[%s2595_s1 + $0xa0] sm:$0xff]  ;;  %v262_v26 = vld [vmem:[%s2595_s1 + $0xa8] sm:$0xff]  ;;  %v1862_v2 = vadd.s32 8, %v1853_v61  ;;  %s1512_s24 = scalar_lea.vmem %s1511_s22, 32  ;;  %p1513_p1 = scmp.lt.s32.totalorder %s1093_s12, %s1511_s22 }
  0x1d   : > { %1394 = vmatprep.subr.mxu0 %v283_v3  ;;  %v263_v27 = vld [vmem:[%s2595_s1 + $0xb0] sm:$0xff]  ;;  %v264_v28 = vld [vmem:[%s2595_s1 + $0xb8] sm:$0xff]  ;;  %v265_v29 = vld [vmem:[%s2595_s1 + $0xc0] sm:$0xff]  ;;  %p1508_p13 = pnand %p1507_p12, %p1651_p4  ;;  %p1514_p2 = scmp.lt.s32.totalorder %s1512_s24, %s1506_s14 }
  0x1e   : > { %1395 = vmatpush3.msra.mxu0 %v283_v3  ;;  %v266_v30 = vld [vmem:[%s2595_s1 + $0xc8] sm:$0xff]  ;;  %v267_v31 = vld [vmem:[%s2595_s1 + $0xd0] sm:$0xff]  ;;  %v268_v32 = vld [vmem:[%s2595_s1 + $0xd8] sm:$0xff] }
  0x1f   : > { %1396 = vmatprep.subr.mxu0 %v282_v4  ;;  %v269_v33 = vld [vmem:[%s2595_s1 + $0xe0] sm:$0xff]  ;;  %v270_v34 = vld [vmem:[%s2595_s1 + $0xe8] sm:$0xff]  ;;  %v271_v35 = vld [vmem:[%s2595_s1 + $0xf0] sm:$0xff]  ;;  %p1509_p0 = pneg %p1508_p13  ;;  %p1515_p3 = por %p1514_p2, %p1513_p1 }
  0x20   : > { %1397 = vmatpush3.msra.mxu0 %v282_v4  ;;  %v272_v36 = vld [vmem:[%s2595_s1 + $0xf8] sm:$0xff]  ;;  %v274_v55 = vld [vmem:[%s2596_s2 + $0x8] sm:$0xff] }
  0x21   : > { %1398 = vmatprep.subr.mxu0 %v281_v5  ;;  %1039 = vmatprep.mubr.f32.mxu1 %v274_v55  ;;  %p1516_p5 = pnand %p1515_p3, %p1509_p0 }
  0x22   : > { %1399 = vmatpush3.msra.mxu0 %v281_v5 }
  0x23   : > { %1401 = vmatmul.mubr.msk.f32.vlgmr.msra.gmra.mxu0 %vm350_vm1, %v242_v6 }
  0x24   : > { %1403 = vmatprep.mubr.msk.f32.mxu0 %vm350_vm1, %v243_v7 }
  0x27   : > { %1404 = vmatmul.mubr.msk.f32.gmra.mxu0 %vm350_vm1, %v244_v8 }
  0x28   : > { %1406 = vmatprep.mubr.msk.f32.mxu0 %vm350_vm1, %v245_v9 }
  0x2b   : > { %1407 = vmatmul.mubr.msk.f32.gmra.mxu0 %vm350_vm1, %v246_v10 }
  0x2c   : > { %1409 = vmatprep.mubr.msk.f32.mxu0 %vm350_vm1, %v247_v11 }
  0x2f   : > { %1410 = vmatmul.mubr.msk.f32.gmra.mxu0 %vm350_vm1, %v248_v12 }
  0x30   : > { %1412 = vmatprep.mubr.msk.f32.mxu0 %vm350_vm1, %v249_v13 }
  0x33   : > { %1413 = vmatmul.mubr.msk.f32.gmra.mxu0 %vm350_vm1, %v250_v14 }
  0x34   : > { %1415 = vmatprep.mubr.msk.f32.mxu0 %vm350_vm1, %v251_v15 }
  0x37   : > { %1416 = vmatmul.mubr.msk.f32.gmra.mxu0 %vm350_vm1, %v252_v16 }
  0x38   : > { %1418 = vmatprep.mubr.msk.f32.mxu0 %vm350_vm1, %v253_v17 }
  0x3b   : > { %1419 = vmatmul.mubr.msk.f32.gmra.mxu0 %vm350_vm1, %v254_v18 }
  0x3c   : > { %1421 = vmatprep.mubr.msk.f32.mxu0 %vm350_vm1, %v255_v19 }
  0x3f   : > { %1422 = vmatmul.mubr.msk.f32.gmra.mxu0 %vm350_vm1, %v256_v20 }
  0x40   : > { %1424 = vmatprep.mubr.msk.f32.mxu0 %vm350_vm1, %v257_v21 }
  0x43   : > { %1425 = vmatmul.mubr.msk.f32.gmra.mxu0 %vm350_vm1, %v258_v22 }
  0x44   : > { %1427 = vmatprep.mubr.msk.f32.mxu0 %vm350_vm1, %v259_v23 }
  0x47   : > { %1428 = vmatmul.mubr.msk.f32.gmra.mxu0 %vm350_vm1, %v260_v24 }
  0x48   : > { %1430 = vmatprep.mubr.msk.f32.mxu0 %vm350_vm1, %v261_v25 }
  0x4b   : > { %1431 = vmatmul.mubr.msk.f32.gmra.mxu0 %vm350_vm1, %v262_v26 }
  0x4c   : > { %1433 = vmatprep.mubr.msk.f32.mxu0 %vm350_vm1, %v263_v27 }
  0x4f   : > { %1434 = vmatmul.mubr.msk.f32.gmra.mxu0 %vm350_vm1, %v264_v28 }
  0x50   : > { %1436 = vmatprep.mubr.msk.f32.mxu0 %vm350_vm1, %v265_v29 }
  0x53   : > { %1437 = vmatmul.mubr.msk.f32.gmra.mxu0 %vm350_vm1, %v266_v30 }
  0x54   : > { %1439 = vmatprep.mubr.msk.f32.mxu0 %vm350_vm1, %v267_v31 }
  0x57   : > { %1440 = vmatmul.mubr.msk.f32.gmra.mxu0 %vm350_vm1, %v268_v32 }
  0x58   : > { %1442 = vmatprep.mubr.msk.f32.mxu0 %vm350_vm1, %v269_v33 }
  0x5b   : > { %1443 = vmatmul.mubr.msk.f32.gmra.mxu0 %vm350_vm1, %v270_v34 }
  0x5c   : > { %1445 = vmatprep.mubr.msk.f32.mxu0 %vm350_vm1, %v271_v35 }
  0x5f   : > { %1446 = vmatmul.mubr.msk.f32.gmra.mxu0 %vm350_vm1, %v272_v36 }
  0xe3   : > { %v1806_v37 = vpop.f32.mrf.mxu0 }
  0xe4   : > { %v678_v9 = vsel %vm2613_vm2, %v1806_v37, inf }
  0xe5   : > { %v1808_v38 = vpop.f32.mrf.mxu0 }
  0xe6   : > { %v677_v3 = vsel %vm2613_vm2, %v1808_v38, inf }
  0xe7   : > { %v1810_v39 = vpop.f32.mrf.mxu0 }
  0xe8   : > { %v680_v10 = vsel %vm2613_vm2, %v1810_v39, inf }
  0xe9   : > { %v1812_v40 = vpop.f32.mrf.mxu0 }
  0xea   : > { %v679_v11 = vsel %vm2613_vm2, %v1812_v40, inf }
  0xeb   : > { %v1814_v41 = vpop.f32.mrf.mxu0 }
  0xec   : > { %v683_v5 = vsel %vm2613_vm2, %v1814_v41, inf }
  0xed   : > { %v1816_v42 = vpop.f32.mrf.mxu0  ;;  %v684_v18 = vmin.f32 %v678_v9, %v683_v5 }
  0xee   : > { %v681_v0 = vsel %vm2613_vm2, %v1816_v42, inf }
  0xef   : > { %v1818_v43 = vpop.f32.mrf.mxu0  ;;  %v682_v12 = vmin.f32 %v677_v3, %v681_v0 }
  0xf0   : > { %v687_v6 = vsel %vm2613_vm2, %v1818_v43, inf }
  0xf1   : > { %v1820_v44 = vpop.f32.mrf.mxu0  ;;  %v688_v19 = vmin.f32 %v680_v10, %v687_v6 }
  0xf2   : > { %v685_v7 = vsel %vm2613_vm2, %v1820_v44, inf }
  0xf3   : > { %v1822_v45 = vpop.f32.mrf.mxu0  ;;  %v686_v20 = vmin.f32 %v679_v11, %v685_v7 }
  0xf4   : > { %v691_v14 = vsel %vm2613_vm2, %v1822_v45, inf }
  0xf5   : > { %v1824_v46 = vpop.f32.mrf.mxu0  ;;  %v692_v27 = vmin.f32 %v684_v18, %v691_v14 }
  0xf6   : > { %v689_v8 = vsel %vm2613_vm2, %v1824_v46, inf }
  0xf7   : > { %v1826_v47 = vpop.f32.mrf.mxu0  ;;  %v690_v21 = vmin.f32 %v682_v12, %v689_v8 }
  0xf8   : > { %v695_v15 = vsel %vm2613_vm2, %v1826_v47, inf }
  0xf9   : > { %v1828_v48 = vpop.f32.mrf.mxu0  ;;  %v696_v28 = vmin.f32 %v688_v19, %v695_v15 }
  0xfa   : > { %v693_v16 = vsel %vm2613_vm2, %v1828_v48, inf }
  0xfb   : > { %v1830_v49 = vpop.f32.mrf.mxu0  ;;  %v694_v29 = vmin.f32 %v686_v20, %v693_v16 }
  0xfc   : > { %v699_v23 = vsel %vm2613_vm2, %v1830_v49, inf }
  0xfd   : > { %v1832_v50 = vpop.f32.mrf.mxu0  ;;  %v700_v36 = vmin.f32 %v692_v27, %v699_v23 }
  0xfe   : > { %v697_v17 = vsel %vm2613_vm2, %v1832_v50, inf }
  0xff   : > { %v1834_v51 = vpop.f32.mrf.mxu0  ;;  %v698_v30 = vmin.f32 %v690_v21, %v697_v17 }
 0x100   : > { %v703_v24 = vsel %vm2613_vm2, %v1834_v51, inf }
 0x101   : > { %v1836_v52 = vpop.f32.mrf.mxu0  ;;  %v704_v55 = vmin.f32 %v696_v28, %v703_v24 }
 0x102   : > { %v701_v25 = vsel %vm2613_vm2, %v1836_v52, inf }
 0x103   : > { %v1838_v53 = vpop.f32.mrf.mxu0  ;;  %v702_v58 = vmin.f32 %v694_v29, %v701_v25  ;;  %v1935_v25 = vadd.s32 24, %v1853_v61 }
 0x104   : > { %v707_v32 = vsel %vm2613_vm2, %v1838_v53, inf }
 0x105   : > { %v1840_v54 = vpop.f32.mrf.mxu0  ;;  %v708_v9 = vmin.f32 %v700_v36, %v707_v32  ;;  %v2024_v36 = vadd.s32 176, %v1853_v61 }
 0x106   : > { %v705_v26 = vsel %vm2613_vm2, %v1840_v54, inf }
 0x107   : > { %v1845_v56 = vpop.f32.mrf.mxu0  ;;  %v706_v0 = vmin.f32 %v698_v30, %v705_v26  ;;  %v1938_v26 = vadd.s32 16, %v1853_v61 }
 0x108   : > { %v711_v33 = vsel %vm2613_vm2, %v1845_v56, inf }
 0x109   : > { %v1847_v57 = vpop.f32.mrf.mxu0  ;;  %v712_v10 = vmin.f32 %v704_v55, %v711_v33 }
 0x10a   : > { %v709_v34 = vsel %vm2613_vm2, %v1847_v57, inf }
 0x10b   : > { %v1849_v59 = vpop.f32.mrf.mxu0  ;;  %v710_v11 = vmin.f32 %v702_v58, %v709_v34 }
 0x10c   : > { %v715_v5 = vsel %vm2613_vm2, %v1849_v59, inf }
 0x10d   : > { %v1851_v60 = vpop.f32.mrf.mxu0  ;;  %v716_v19 = vmin.f32 %v708_v9, %v715_v5  ;;  %v1956_v9 = vadd.s32 32, %v1853_v61  ;;  %v2039_v5 = vadd.s32 232, %v1853_v61 }
 0x10e   : > { %v713_v35 = vsel %vm2613_vm2, %v1851_v60, inf }
 0x10f   : > { %v1855_v62 = vpop.f32.mrf.mxu0  ;;  %v714_v12 = vmin.f32 %v706_v0, %v713_v35 }
 0x110   : > { %v719_v6 = vsel %vm2613_vm2, %v1855_v62, inf }
 0x111   : > { %v1857_v63 = vpop.f32.mrf.mxu0  ;;  %v720_v20 = vmin.f32 %v712_v10, %v719_v6  ;;  %v1959_v10 = vadd.s32 56, %v1853_v61 }
 0x112   : > { %v717_v7 = vsel %vm2613_vm2, %v1857_v63, inf }
 0x113   : > { %v1866_v4 = vpop.f32.mrf.mxu0  ;;  %v718_v21 = vmin.f32 %v710_v11, %v717_v7  ;;  %2616 = vst [vmem:[#allocation5_spill] sm:$0xff] %v1959_v10  ;;  %v2036_v7 = vadd.s32 208, %v1853_v61 }
 0x114   : > { %v723_v15 = vsel %vm2613_vm2, %v1866_v4, inf }
 0x115   : > { %v1882_v13 = vpop.f32.mrf.mxu0  ;;  %v724_v29 = vmin.f32 %v716_v19, %v723_v15  ;;  %v1962_v15 = vadd.s32 48, %v1853_v61  ;;  %v1974_v19 = vadd.s32 80, %v1853_v61 }
 0x116   : > { %v721_v8 = vsel %vm2613_vm2, %v1882_v13, inf }
 0x117   : > { %v1892_v22 = vpop.f32.mrf.mxu0  ;;  %v722_v23 = vmin.f32 %v714_v12, %v721_v8  ;;  %v1953_v8 = vadd.s32 40, %v1853_v61  ;;  %2617 = vst [vmem:[#allocation6_spill] sm:$0xff] %v1962_v15  ;;  %2621 = vst [vmem:[#allocation10_spill] sm:$0xff] %v1974_v19  ;;  %v340_v19 = vcvt.s32.f32 %v2024_v36  ;;  %v344_v15 = vcvt.s32.f32 %v2036_v7 }
 0x118   : > { %v727_v16 = vsel %vm2613_vm2, %v1892_v22, inf  ;;  %v2680_v36 = vcvt.s32.f32 %v2039_v5 }
 0x119   : > { %v1902_v31 = vpop.f32.mrf.mxu0  ;;  %v728_v30 = vmin.f32 %v720_v20, %v727_v16  ;;  %v1965_v16 = vadd.s32 72, %v1853_v61  ;;  %v1977_v20 = vadd.s32 104, %v1853_v61 }
 0x11a   : > { %v725_v17 = vsel %vm2613_vm2, %v1902_v31, inf }
 0x11b   : > { %v1912_v3 = vpop.f32.mrf.mxu0  ;;  %v726_v32 = vmin.f32 %v718_v21, %v725_v17  ;;  %2618 = vst [vmem:[#allocation7_spill] sm:$0xff] %v1965_v16  ;;  %v1968_v17 = vadd.s32 64, %v1853_v61  ;;  %2622 = vst [vmem:[#allocation11_spill] sm:$0xff] %v1977_v20  ;;  %v1980_v21 = vadd.s32 96, %v1853_v61  ;;  %v2630_v20 = vcvt.s32.f32 %v1938_v26 }
 0x11c   : > { %v731_v27 = vsel %vm2613_vm2, %v1912_v3, inf  ;;  %v2633_v26 = vcvt.s32.f32 %v1953_v8 }
 0x11d   : > { %v1922_v14 = vpop.f32.mrf.mxu0  ;;  %v732_v55 = vmin.f32 %v724_v29, %v731_v27  ;;  %2619 = vst [vmem:[#allocation8_spill] sm:$0xff] %v1968_v17  ;;  %2623 = vst [vmem:[#allocation12_spill] sm:$0xff] %v1980_v21  ;;  %v1983_v27 = vadd.s32 120, %v1853_v61  ;;  %v1989_v29 = vadd.s32 136, %v1853_v61 }
 0x11e   : > { %v729_v18 = vsel %vm2613_vm2, %v1922_v14, inf }
 0x11f   : > { %v1932_v24 = vpop.f32.mrf.mxu0  ;;  %v730_v33 = vmin.f32 %v722_v23, %v729_v18  ;;  %v1971_v18 = vadd.s32 88, %v1853_v61  ;;  %2624 = vst [vmem:[#allocation13_spill] sm:$0xff] %v1983_v27  ;;  %2626 = vst [vmem:[#allocation15_spill] sm:$0xff] %v1989_v29  ;;  %v2042_v29 = vadd.s32 224, %v1853_v61  ;;  %v2048_v27 = vadd.s32 248, %v1853_v61 }
 0x120   : > { %v735_v28 = vsel %vm2613_vm2, %v1932_v24, inf }
 0x121   : > { %v1944_v34 = vpop.f32.mrf.mxu0  ;;  %v736_v58 = vmin.f32 %v728_v30, %v735_v28  ;;  %v737_v11 = vmin.f32 %v730_v33, %v732_v55  ;;  %2620 = vst [vmem:[#allocation9_spill] sm:$0xff] %v1971_v18  ;;  %v1986_v28 = vadd.s32 112, %v1853_v61  ;;  %v1992_v30 = vadd.s32 128, %v1853_v61 }
 0x122   : > { %v733_v35 = vsel %vm2613_vm2, %v1944_v34, inf  ;;  %v2030_v33 = vadd.s32 192, %v1853_v61 }
 0x123   : > { %v734_v0 = vmin.f32 %v726_v32, %v733_v35  ;;  %2625 = vst [vmem:[#allocation14_spill] sm:$0xff] %v1986_v28  ;;  %2627 = vst [vmem:[#allocation16_spill] sm:$0xff] %v1992_v30  ;;  %v2033_v35 = vadd.s32 216, %v1853_v61  ;;  %v2045_v30 = vadd.s32 240, %v1853_v61 }
 0x124   : > { %v342_v17 = vcvt.s32.f32 %v2030_v33  ;;  %v2638_v8 = vld [vmem:[#allocation8_spill] sm:$0xff] }
 0x125   : > { %v738_v12 = vmin.f32 %v734_v0, %v736_v58  ;;  %v2009_v0 = vadd.s32 152, %v1853_v61  ;;  %v2027_v58 = vadd.s32 200, %v1853_v61  ;;  %v345_v10 = vcvt.s32.f32 %v2033_v35 }
 0x126   : > { %v2681_v7 = vcvt.s32.f32 %v2045_v30 }
 0x127   : > { %v739_v23 = vmin.f32 %v737_v11, %v738_v12  ;;  %v2012_v12 = vadd.s32 144, %v1853_v61  ;;  %v343_v16 = vcvt.s32.f32 %v2027_v58 }
 0x129   : > { %v740_v55 = vrot.slane %v739_v23, 4 }
 0x12b   : > { %v741_v32 = vmin.f32 %v739_v23, %v740_v55  ;;  %v2018_v23 = vadd.s32 160, %v1853_v61  ;;  %v2021_v55 = vadd.s32 184, %v1853_v61 }
 0x12d   : > { %v742_v6 = vrot.slane %v741_v32, 2 }
 0x12f   : > { %v743_v11 = vmin.f32 %v741_v32, %v742_v6  ;;  %v2629_v32 = vcvt.s32.f32 %v1862_v2  ;;  %v2632_v2 = vcvt.s32.f32 %v1956_v9  ;;  %v2636_v9 = vld [vmem:[#allocation5_spill] sm:$0xff] }
 0x131   : > { %v744_v18 = vrot.slane %v743_v11, 1 }
 0x133   : > { %v2060_v28 = vmin.f32 %v743_v11, %v744_v18  ;;  %v2628_v18 = vcvt.s32.f32 %v1853_v61  ;;  %v2631_v61 = vcvt.s32.f32 %v1935_v25  ;;  %v2634_v25 = vld [vmem:[#allocation6_spill] sm:$0xff] }
 0x135   : > { %vm746_vm3 = vcmp.le.f32.partialorder %v1808_v38, %v2060_v28  ;;  %vm747_vm4 = vcmp.le.f32.partialorder %v1806_v37, %v2060_v28  ;;  %vm748_vm5 = vcmp.le.f32.partialorder %v1812_v40, %v2060_v28  ;;  %vm749_vm6 = vcmp.le.f32.partialorder %v1810_v39, %v2060_v28 }
 0x136   : > { %vm750_vm7 = vcmp.le.f32.partialorder %v1816_v42, %v2060_v28  ;;  %vm751_vm8 = vcmp.le.f32.partialorder %v1814_v41, %v2060_v28  ;;  %vm752_vm9 = vcmp.le.f32.partialorder %v1820_v44, %v2060_v28  ;;  %vm753_vm10 = vcmp.le.f32.partialorder %v1818_v43, %v2060_v28 }
 0x137   : > { %vm754_vm11 = vcmp.le.f32.partialorder %v1824_v46, %v2060_v28  ;;  %vm771_vm14 = vcmp.le.f32.partialorder %v1866_v4, %v2060_v28  ;;  %vm772_vm15 = vcmp.le.f32.partialorder %v1902_v31, %v2060_v28  ;;  %vm773_vm0 = vcmp.le.f32.partialorder %v1892_v22, %v2060_v28 }
 0x138   : > { %vm774_vm1 = vcmp.le.f32.partialorder %v1922_v14, %v2060_v28  ;;  %vm775_vm2 = vcmp.le.f32.partialorder %v1912_v3, %v2060_v28  ;;  %vm776_vm12 = vcmp.le.f32.partialorder %v1944_v34, %v2060_v28  ;;  %vm777_vm13 = vcmp.le.f32.partialorder %v1932_v24, %v2060_v28 }
 0x139   : > { %v2135_v11 = vsel %vm746_vm3, %v2628_v18, 256.0  ;;  %v2142_v6 = vsel %vm747_vm4, %v2629_v32, 256.0  ;;  %v2149_v21 = vsel %vm748_vm5, %v2630_v20, 256.0  ;;  %v2156_v38 = vsel %vm749_vm6, %v2631_v61, 256.0  ;;  %v2640_v61 = vld [vmem:[#allocation7_spill] sm:$0xff] }
 0x13a   : > { %v2163_v37 = vsel %vm750_vm7, %v2632_v2, 256.0  ;;  %v2170_v40 = vsel %vm751_vm8, %v2633_v26, 256.0  ;;  %v2635_v20 = vcvt.s32.f32 %v2634_v25  ;;  %v2637_v32 = vcvt.s32.f32 %v2636_v9  ;;  %v2643_v26 = vld [vmem:[#allocation10_spill] sm:$0xff] }
 0x13b   : > { %v2639_v18 = vcvt.s32.f32 %v2638_v8  ;;  %v2641_v2 = vcvt.s32.f32 %v2640_v61  ;;  %vm2642_vm3 = vcmp.le.f32.partialorder %v1822_v45, %v2060_v28  ;;  %v2644_v25 = vcvt.s32.f32 %v2643_v26 }
 0x13c   : > { %v2177_v39 = vsel %vm752_vm9, %v2635_v20, 256.0  ;;  %v2184_v42 = vsel %vm753_vm10, %v2637_v32, 256.0  ;;  %vm2645_vm4 = vcmp.le.f32.partialorder %v1828_v48, %v2060_v28  ;;  %v2646_v20 = vld [vmem:[#allocation9_spill] sm:$0xff]  ;;  %vm2648_vm5 = vcmp.le.f32.partialorder %v1826_v47, %v2060_v28  ;;  %v2649_v32 = vld [vmem:[#allocation12_spill] sm:$0xff] }
 0x13d   : > { %v2191_v41 = vsel %vm754_vm11, %v2639_v18, 256.0  ;;  %v2198_v44 = vsel %vm2642_vm3, %v2641_v2, 256.0  ;;  %v2205_v43 = vsel %vm2645_vm4, %v2644_v25, 256.0  ;;  %v2647_v9 = vcvt.s32.f32 %v2646_v20  ;;  %v2652_v18 = vld [vmem:[#allocation11_spill] sm:$0xff]  ;;  %v2655_v2 = vld [vmem:[#allocation14_spill] sm:$0xff]  ;;  %v2658_v25 = vld [vmem:[#allocation13_spill] sm:$0xff] }
 0x13e   : > { %v2650_v8 = vcvt.s32.f32 %v2649_v32  ;;  %vm2651_vm6 = vcmp.le.f32.partialorder %v1832_v50, %v2060_v28  ;;  %v2653_v61 = vcvt.s32.f32 %v2652_v18  ;;  %vm2654_vm7 = vcmp.le.f32.partialorder %v1830_v49, %v2060_v28 }
 0x13f   : > { %v2212_v46 = vsel %vm2648_vm5, %v2647_v9, 256.0  ;;  %v2656_v26 = vcvt.s32.f32 %v2655_v2  ;;  %vm2657_vm8 = vcmp.le.f32.partialorder %v1836_v52, %v2060_v28  ;;  %v2659_v20 = vcvt.s32.f32 %v2658_v25  ;;  %v2661_v9 = vld [vmem:[#allocation16_spill] sm:$0xff] }
 0x140   : > { %v2219_v45 = vsel %vm2651_vm6, %v2650_v8, 256.0  ;;  %v2226_v48 = vsel %vm2654_vm7, %v2653_v61, 256.0  ;;  %vm2660_vm9 = vcmp.le.f32.partialorder %v1834_v51, %v2060_v28  ;;  %v2662_v32 = vcvt.s32.f32 %v2661_v9  ;;  %v2664_v8 = vld [vmem:[#allocation15_spill] sm:$0xff] }
 0x141   : > { %v2233_v47 = vsel %vm2657_vm8, %v2656_v26, 256.0  ;;  %v2240_v50 = vsel %vm2660_vm9, %v2659_v20, 256.0  ;;  %vm2663_vm10 = vcmp.le.f32.partialorder %v1840_v54, %v2060_v28  ;;  %v2665_v18 = vcvt.s32.f32 %v2664_v8 }
 0x142   : > { %v2247_v49 = vsel %vm2663_vm10, %v2662_v32, 256.0  ;;  %vm2666_vm11 = vcmp.le.f32.partialorder %v1838_v53, %v2060_v28  ;;  %v2667_v61 = vcvt.s32.f32 %v2012_v12  ;;  %vm2668_vm3 = vcmp.le.f32.partialorder %v1847_v57, %v2060_v28 }
 0x143   : > { %v2254_v52 = vsel %vm2666_vm11, %v2665_v18, 256.0  ;;  %v2669_v2 = vcvt.s32.f32 %v2009_v0  ;;  %vm2670_vm4 = vcmp.le.f32.partialorder %v1845_v56, %v2060_v28  ;;  %v2671_v26 = vcvt.s32.f32 %v2018_v23 }
 0x144   : > { %v2261_v51 = vsel %vm2668_vm3, %v2667_v61, 256.0  ;;  %vm2672_vm5 = vcmp.le.f32.partialorder %v1851_v60, %v2060_v28  ;;  %v2673_v12 = vcvt.s32.f32 %v2015_v1  ;;  %vm2674_vm6 = vcmp.le.f32.partialorder %v1849_v59, %v2060_v28 }
 0x145   : > { %v2268_v54 = vsel %vm2670_vm4, %v2669_v2, 256.0  ;;  %v2275_v53 = vsel %vm2672_vm5, %v2671_v26, 256.0  ;;  %vm2675_vm7 = vcmp.le.f32.partialorder %v1857_v63, %v2060_v28  ;;  %v2676_v0 = vcvt.s32.f32 %v2021_v55 }
 0x146   : > { %v2282_v57 = vsel %vm2674_vm6, %v2673_v12, 256.0  ;;  %v2289_v56 = vsel %vm2675_vm7, %v340_v19, 256.0  ;;  %vm2677_vm8 = vcmp.le.f32.partialorder %v1855_v62, %v2060_v28  ;;  %vm2678_vm9 = vcmp.le.f32.partialorder %v1882_v13, %v2060_v28 }
 0x147   : > { %v2296_v60 = vsel %vm2677_vm8, %v2676_v0, 256.0  ;;  %v2303_v1 = vsel %vm2678_vm9, %v342_v17, 256.0  ;;  %v2310_v59 = vsel %vm771_vm14, %v343_v16, 256.0  ;;  %v2317_v62 = vsel %vm772_vm15, %v344_v15, 256.0 }
 0x148   : > { %v2324_v63 = vsel %vm773_vm0, %v345_v10, 256.0  ;;  %v2679_v13 = vcvt.s32.f32 %v2042_v29  ;;  %v2338_v31 = vsel %vm775_vm2, %v2680_v36, 256.0  ;;  %v2345_v22 = vsel %vm776_vm12, %v2681_v7, 256.0 }
 0x149   : > { %v2682_v10 = vcvt.s32.f32 %v2048_v27  ;;  %vm2683_vm14 = vcmask 130048  }
 0x14a   : > { %v2331_v4 = vsel %vm774_vm1, %v2679_v13, 256.0  ;;  %v810_v5 = vsel %vm2683_vm14, %v2135_v11, inf  ;;  %vm2684_vm2 = vmmov %vm2683_vm14 }
 0x14b   : > { %v2352_v14 = vsel %vm777_vm13, %v2682_v10, 256.0  ;;  %v811_v3 = vsel %vm2684_vm2, %v2142_v6, inf  ;;  %vm2685_vm15 = vmmov %vm2684_vm2 }
 0x14c   : > { %v812_v15 = vsel %vm2685_vm15, %v2149_v21, inf  ;;  %vm2686_vm0 = vmmov %vm2684_vm2 }
 0x14d   : > { %v813_v34 = vsel %vm2686_vm0, %v2156_v38, inf  ;;  %vm2687_vm12 = vmmov %vm2686_vm0  ;;  %v844_v10 = vsel %vm2686_vm0, %v2268_v54, inf }
 0x14e   : > { %v814_v16 = vsel %vm2687_vm12, %v2163_v37, inf  ;;  %vm2688_vm1 = vmmov %vm2686_vm0 }
 0x14f   : > { %v816_v24 = vsel %vm2688_vm1, %v2170_v40, inf  ;;  %vm2689_vm13 = vmmov %vm2686_vm0  ;;  %v815_v27 = vmin.f32 %v810_v5, %v814_v16 }
 0x150   : > { %v818_v17 = vsel %vm2689_vm13, %v2177_v39, inf  ;;  %vm2690_vm10 = vmmov %vm2686_vm0  ;;  %v817_v28 = vmin.f32 %v811_v3, %v816_v24 }
 0x151   : > { %v820_v19 = vsel %vm2690_vm10, %v2184_v42, inf  ;;  %v819_v29 = vmin.f32 %v812_v15, %v818_v17  ;;  %vm2691_vm11 = vmmov %vm2686_vm0 }
 0x152   : > { %v821_v30 = vmin.f32 %v813_v34, %v820_v19  ;;  %v822_v33 = vsel %vm2691_vm11, %v2191_v41, inf  ;;  %vm2692_vm3 = vmmov %vm2686_vm0 }
 0x153   : > { %v824_v35 = vsel %vm2692_vm3, %v2198_v44, inf  ;;  %vm2693_vm4 = vmmov %vm2686_vm0  ;;  %v823_v55 = vmin.f32 %v815_v27, %v822_v33 }
 0x154   : > { %v826_v58 = vsel %vm2693_vm4, %v2205_v43, inf  ;;  %vm2694_vm5 = vmmov %vm2686_vm0  ;;  %v825_v25 = vmin.f32 %v817_v28, %v824_v35 }
 0x155   : > { %v828_v23 = vsel %vm2694_vm5, %v2212_v46, inf  ;;  %v827_v20 = vmin.f32 %v819_v29, %v826_v58  ;;  %vm2695_vm6 = vmmov %vm2686_vm0 }
 0x156   : > { %v829_v9 = vmin.f32 %v821_v30, %v828_v23  ;;  %v830_v32 = vsel %vm2695_vm6, %v2219_v45, inf  ;;  %vm2696_vm7 = vmmov %vm2686_vm0 }
 0x157   : > { %v832_v8 = vsel %vm2696_vm7, %v2226_v48, inf  ;;  %vm2697_vm8 = vmmov %vm2686_vm0  ;;  %v831_v2 = vmin.f32 %v823_v55, %v830_v32 }
 0x158   : > { %v834_v18 = vsel %vm2697_vm8, %v2233_v47, inf  ;;  %vm2698_vm9 = vmmov %vm2686_vm0  ;;  %v833_v26 = vmin.f32 %v825_v25, %v832_v8 }
 0x159   : > { %v836_v61 = vsel %vm2698_vm9, %v2240_v50, inf  ;;  %v835_v12 = vmin.f32 %v827_v20, %v834_v18  ;;  %vm2699_vm14 = vmmov %vm2686_vm0 }
 0x15a   : > { %v837_v0 = vmin.f32 %v829_v9, %v836_v61  ;;  %v838_v13 = vsel %vm2699_vm14, %v2247_v49, inf  ;;  %vm2700_vm2 = vmmov %vm2686_vm0 }
 0x15b   : > { %v840_v36 = vsel %vm2700_vm2, %v2254_v52, inf  ;;  %vm2701_vm15 = vmmov %vm2686_vm0  ;;  %v839_v5 = vmin.f32 %v831_v2, %v838_v13 }
 0x15c   : > { %v842_v7 = vsel %vm2701_vm15, %v2261_v51, inf  ;;  %v841_v3 = vmin.f32 %v833_v26, %v840_v36  ;;  %v845_v34 = vmin.f32 %v837_v0, %v844_v10  ;;  %vm2702_vm12 = vmmov %vm2686_vm0 }
 0x15d   : > { %v843_v15 = vmin.f32 %v835_v12, %v842_v7  ;;  %v846_v16 = vsel %vm2702_vm12, %v2275_v53, inf  ;;  %vm2703_vm1 = vmmov %vm2686_vm0 }
 0x15e   : > { %v848_v24 = vsel %vm2703_vm1, %v2282_v57, inf  ;;  %vm2704_vm13 = vmmov %vm2686_vm0  ;;  %v847_v27 = vmin.f32 %v839_v5, %v846_v16 }
 0x15f   : > { %v850_v17 = vsel %vm2704_vm13, %v2289_v56, inf  ;;  %vm2705_vm10 = vmmov %vm2686_vm0  ;;  %v849_v28 = vmin.f32 %v841_v3, %v848_v24  ;;  %v2714_v24 = vmov 1.0  }
 0x160   : > { %v852_v19 = vsel %vm2705_vm10, %v2296_v60, inf  ;;  %v851_v29 = vmin.f32 %v843_v15, %v850_v17  ;;  %vm2706_vm11 = vmmov %vm2686_vm0 }
 0x161   : > { %v853_v30 = vmin.f32 %v845_v34, %v852_v19  ;;  %v854_v33 = vsel %vm2706_vm11, %v2303_v1, inf  ;;  %vm2707_vm3 = vmmov %vm2686_vm0 }
 0x162   : > { %v856_v35 = vsel %vm2707_vm3, %v2310_v59, inf  ;;  %vm2708_vm4 = vmmov %vm2686_vm0  ;;  %v855_v55 = vmin.f32 %v847_v27, %v854_v33 }
 0x163   : > { %v858_v58 = vsel %vm2708_vm4, %v2317_v62, inf  ;;  %vm2709_vm5 = vmmov %vm2686_vm0  ;;  %v857_v25 = vmin.f32 %v849_v28, %v856_v35  ;;  %vm1061_vm4 = vcmask 122880  }
 0x164   : > { %v860_v23 = vsel %vm2709_vm5, %v2324_v63, inf  ;;  %v859_v20 = vmin.f32 %v851_v29, %v858_v58  ;;  %vm2710_vm6 = vmmov %vm2686_vm0 }
 0x165   : > { %v861_v9 = vmin.f32 %v853_v30, %v860_v23  ;;  %v862_v32 = vsel %vm2710_vm6, %v2331_v4, inf  ;;  %vm2711_vm7 = vmmov %vm2686_vm0 }
 0x166   : > { %v864_v8 = vsel %vm2711_vm7, %v2338_v31, inf  ;;  %vm2712_vm8 = vmmov %vm2686_vm0  ;;  %v863_v2 = vmin.f32 %v855_v55, %v862_v32 }
 0x167   : > { %v866_v18 = vsel %vm2712_vm8, %v2345_v22, inf  ;;  %vm2713_vm9 = vmmov %vm2686_vm0  ;;  %v865_v26 = vmin.f32 %v857_v25, %v864_v8 }
 0x168   : > { %v868_v61 = vsel %vm2713_vm9, %v2352_v14, inf  ;;  %v867_v12 = vmin.f32 %v859_v20, %v866_v18 }
 0x169   : > { %v869_v0 = vmin.f32 %v861_v9, %v868_v61  ;;  %v870_v13 = vmin.f32 %v863_v2, %v865_v26 }
 0x16b   : > { %v871_v36 = vmin.f32 %v867_v12, %v869_v0 }
 0x16d   : > { %v872_v7 = vmin.f32 %v870_v13, %v871_v36 }
 0x16f   : > { %v873_v10 = vrot.slane %v872_v7, 4 }
 0x171   : > { %v874_v5 = vmin.f32 %v872_v7, %v873_v10 }
 0x173   : > { %v875_v3 = vrot.slane %v874_v5, 2 }
 0x175   : > { %v876_v15 = vmin.f32 %v874_v5, %v875_v3 }
 0x177   : > { %v877_v34 = vrot.slane %v876_v15, 1 }
 0x179   : > { %v2418_v16 = vmin.f32 %v876_v15, %v877_v34 }
 0x17b   : > { %vm910_vm14 = vcmp.eq.f32.partialorder %v2352_v14, %v2418_v16  ;;  %vm894_vm2 = vcmp.eq.f32.partialorder %v2240_v50, %v2418_v16  ;;  %vm909_vm15 = vcmp.eq.f32.partialorder %v2345_v22, %v2418_v16  ;;  %vm893_vm0 = vcmp.eq.f32.partialorder %v2233_v47, %v2418_v16 }
 0x17c   : > { %1346 = vmatprep.subr.msk.mxu1 %vm910_vm14, %v2714_v24  ;;  %vm908_vm12 = vcmp.eq.f32.partialorder %v2338_v31, %v2418_v16  ;;  %vm892_vm1 = vcmp.eq.f32.partialorder %v2226_v48, %v2418_v16  ;;  %vm907_vm13 = vcmp.eq.f32.partialorder %v2331_v4, %v2418_v16  ;;  %vm891_vm10 = vcmp.eq.f32.partialorder %v2219_v45, %v2418_v16 }
 0x17d   : > { %1347 = vmatpush3.msk.msra.mxu1 %vm894_vm2, %v2714_v24  ;;  %vm906_vm11 = vcmp.eq.f32.partialorder %v2324_v63, %v2418_v16  ;;  %v1448_v47 = vtrunc.f32 %v2418_v16  ;;  %vm890_vm3 = vcmp.eq.f32.partialorder %v2212_v46, %v2418_v16  ;;  %vm905_vm5 = vcmp.eq.f32.partialorder %v2317_v62, %v2418_v16 }
 0x17e   : > { %1348 = vmatprep.subr.msk.mxu1 %vm909_vm15, %v2714_v24  ;;  %vm889_vm6 = vcmp.eq.f32.partialorder %v2205_v43, %v2418_v16  ;;  %vm904_vm7 = vcmp.eq.f32.partialorder %v2310_v59, %v2418_v16  ;;  %vm888_vm8 = vcmp.eq.f32.partialorder %v2198_v44, %v2418_v16  ;;  %vm903_vm9 = vcmp.eq.f32.partialorder %v2303_v1, %v2418_v16 }
 0x17f   : > { %1349 = vmatpush3.msk.msra.mxu1 %vm893_vm0, %v2714_v24  ;;  %v1449_v48 = vcvt.f32.s32 %v1448_v47  ;;  %vm887_vm14 = vcmp.eq.f32.partialorder %v2191_v41, %v2418_v16  ;;  %vm902_vm2 = vcmp.eq.f32.partialorder %v2296_v60, %v2418_v16  ;;  %vm886_vm15 = vcmp.eq.f32.partialorder %v2184_v42, %v2418_v16 }
 0x180   : > { %1350 = vmatprep.subr.msk.mxu1 %vm908_vm12, %v2714_v24  ;;  %vm901_vm0 = vcmp.eq.f32.partialorder %v2289_v56, %v2418_v16  ;;  %vm885_vm12 = vcmp.eq.f32.partialorder %v2177_v39, %v2418_v16  ;;  %v279_v39 = vld [vmem:[%s2596_s2 + $0x30] sm:$0xff] }
 0x181   : > { %1351 = vmatpush3.msk.msra.mxu1 %vm892_vm1, %v2714_v24  ;;  %1062 = vst.msk [vmem:[%s2462_s29] sm:$0x1] %vm1061_vm4, %v1449_v48  ;;  %vm900_vm1 = vcmp.eq.f32.partialorder %v2282_v57, %v2418_v16  ;;  %vm882_vm4 = vcmp.eq.f32.partialorder %v2156_v38, %v2418_v16  ;;  %v273_v38 = vld [vmem:[%s2596_s2] sm:$0xff] }
 0x182   : > { %1352 = vmatprep.subr.msk.mxu1 %vm907_vm13, %v2714_v24  ;;  %vm884_vm13 = vcmp.eq.f32.partialorder %v2170_v40, %v2418_v16  ;;  %v280_v40 = vld [vmem:[%s2596_s2 + $0x38] sm:$0xff] }
 0x183   : > { %1353 = vmatpush3.msk.msra.mxu1 %vm891_vm10, %v2714_v24  ;;  %vm899_vm10 = vcmp.eq.f32.partialorder %v2275_v53, %v2418_v16 }
 0x184   : > { %1354 = vmatprep.subr.msk.mxu1 %vm906_vm11, %v2714_v24  ;;  %vm883_vm11 = vcmp.eq.f32.partialorder %v2163_v37, %v2418_v16  ;;  %v278_v37 = vld [vmem:[%s2596_s2 + $0x28] sm:$0xff] }
 0x185   : > { %1355 = vmatpush3.msk.msra.mxu1 %vm890_vm3, %v2714_v24  ;;  %vm898_vm3 = vcmp.eq.f32.partialorder %v2268_v54, %v2418_v16 }
 0x186   : > { %1356 = vmatprep.subr.msk.mxu1 %vm905_vm5, %v2714_v24  ;;  %vm897_vm5 = vcmp.eq.f32.partialorder %v2261_v51, %v2418_v16 }
 0x187   : > { %1357 = vmatpush3.msk.msra.mxu1 %vm889_vm6, %v2714_v24  ;;  %vm881_vm6 = vcmp.eq.f32.partialorder %v2149_v21, %v2418_v16  ;;  %v276_v21 = vld [vmem:[%s2596_s2 + $0x18] sm:$0xff] }
 0x188   : > { %1358 = vmatprep.subr.msk.mxu1 %vm904_vm7, %v2714_v24  ;;  %vm896_vm7 = vcmp.eq.f32.partialorder %v2254_v52, %v2418_v16 }
 0x189   : > { %1359 = vmatpush3.msk.msra.mxu1 %vm888_vm8, %v2714_v24  ;;  %vm880_vm8 = vcmp.eq.f32.partialorder %v2142_v6, %v2418_v16  ;;  %v275_v6 = vld [vmem:[%s2596_s2 + $0x10] sm:$0xff] }
 0x18a   : > { %1360 = vmatprep.subr.msk.mxu1 %vm903_vm9, %v2714_v24  ;;  %vm895_vm9 = vcmp.eq.f32.partialorder %v2247_v49, %v2418_v16 }
 0x18b   : > { %1361 = vmatpush3.msk.msra.mxu1 %vm887_vm14, %v2714_v24  ;;  %vm879_vm14 = vcmp.eq.f32.partialorder %v2135_v11, %v2418_v16  ;;  %v277_v11 = vld [vmem:[%s2596_s2 + $0x20] sm:$0xff] }
 0x18c   : > { %1362 = vmatprep.subr.msk.mxu1 %vm902_vm2, %v2714_v24 }
 0x18d   : > { %1363 = vmatpush3.msk.msra.mxu1 %vm886_vm15, %v2714_v24 }
 0x18e   : > { %1364 = vmatprep.subr.msk.mxu1 %vm901_vm0, %v2714_v24 }
 0x18f   : > { %1365 = vmatpush3.msk.msra.mxu1 %vm885_vm12, %v2714_v24 }
 0x190   : > { %1366 = vmatprep.subr.msk.mxu1 %vm900_vm1, %v2714_v24 }
 0x191   : > { %1367 = vmatpush3.msk.msra.mxu1 %vm884_vm13, %v2714_v24 }
 0x192   : > { %1368 = vmatprep.subr.msk.mxu1 %vm899_vm10, %v2714_v24 }
 0x193   : > { %1369 = vmatpush3.msk.msra.mxu1 %vm883_vm11, %v2714_v24 }
 0x194   : > { %1370 = vmatprep.subr.msk.mxu1 %vm898_vm3, %v2714_v24 }
 0x195   : > { %1371 = vmatpush3.msk.msra.mxu1 %vm882_vm4, %v2714_v24 }
 0x196   : > { %1372 = vmatprep.subr.msk.mxu1 %vm897_vm5, %v2714_v24 }
 0x197   : > { %1373 = vmatpush3.msk.msra.mxu1 %vm881_vm6, %v2714_v24 }
 0x198   : > { %1374 = vmatprep.subr.msk.mxu1 %vm896_vm7, %v2714_v24 }
 0x199   : > { %1375 = vmatpush3.msk.msra.mxu1 %vm880_vm8, %v2714_v24 }
 0x19a   : > { %1376 = vmatprep.subr.msk.mxu1 %vm895_vm9, %v2714_v24 }
 0x19b   : > { %1377 = vmatpush3.msk.msra.mxu1 %vm879_vm14, %v2714_v24 }
 0x19c   : > { %1040 = vmatmul.mubr.f32.vlgmr.msra.gmra.mxu1 %v273_v38 }
 0x19d   : > { %1044 = vmatprep.mubr.f32.mxu1 %v276_v21 }
 0x1a0   : > { %1045 = vmatmul.mubr.f32.gmra.mxu1 %v275_v6 }
 0x1a1   : > { %1049 = vmatprep.mubr.f32.mxu1 %v278_v37 }
 0x1a4   : > { %1050 = vmatmul.mubr.f32.gmra.mxu1 %v277_v11 }
 0x1a5   : > { %1054 = vmatprep.mubr.f32.mxu1 %v280_v40 }
 0x1a8   : > { %1055 = vmatmul.mubr.f32.gmra.mxu1 %v279_v39 }
 0x1a9   : > { %1519 = shalt.err (!%p1516_p5)
}
 0x1aa   : > { %s1520_s18 = scalar_lea.hbm %s1090_s11, 16  ;;  %s1524_s30 = scalar_lea.hbm %s2598_s4, 32 }
 0x1ab   : > { %p1521_p6 = scmp.ne.s32.totalorder %s1090_s11, %s1520_s18  ;;  %p1525_p10 = scmp.lt.s32.totalorder %s1090_s11, %s2598_s4 }
 0x1ac   : > { %p1526_p11 = scmp.lt.s32.totalorder %s1524_s30, %s1520_s18 }
 0x1ad   : > { %p1522_p7 = pnand %p1521_p6, %p1651_p4 }
 0x1ae   : > { %p1527_p12 = por %p1526_p11, %p1525_p10 }
 0x1af   : > { %p1523_p9 = pneg %p1522_p7 }
 0x1b1   : > { %p1528_p13 = pnand %p1527_p12, %p1523_p9 }
 0x1b3   : > { %1531 = shalt.err (!%p1528_p13)
}
 0x1b4   : > { %1450 = dma.vmem_to_hbm [thread:$0]  (%p1651_p4), %s1093_s12, 16, %s1090_s11, %s1076_s13   ;;  %vm2715_vm2 = vcmask 130048  }
 0x1b5   : > { %s240_s14 = scalar_lea.vmem %s2597_s3, %s1307_s6  ;;  %vm2716_vm15 = vmmov %vm2715_vm2 }
 0x1b6   : > { %vm2717_vm0 = vmmov %vm2715_vm2 }
 0x1b7   : > { %vm2718_vm12 = vmmov %vm2717_vm0 }
 0x25c   : > { %v1378_v42 = vpop.f32.mrf.mxu1 }
 0x25e   : > { %v1379_v41 = vpop.f32.mrf.mxu1 }
 0x25f   : > { %v1380_v44 = vadd.f32 %v1379_v41, %v1378_v42 }
 0x260   : > { %v1381_v43 = vpop.f32.mrf.mxu1 }
 0x261   : > { %1063 = vst.msk [vmem:[%s240_s14] sm:$0xff] %vm2715_vm2, %v1380_v44 }
 0x262   : > { %v1382_v46 = vpop.f32.mrf.mxu1 }
 0x263   : > { %v1383_v45 = vadd.f32 %v1382_v46, %v1381_v43 }
 0x264   : > { %v1384_v50 = vpop.f32.mrf.mxu1 }
 0x265   : > { %1064 = vst.msk [vmem:[%s240_s14 + $0x8] sm:$0xff] %vm2716_vm15, %v1383_v45 }
 0x266   : > { %v1385_v49 = vpop.f32.mrf.mxu1 }
 0x267   : > { %v1386_v52 = vadd.f32 %v1385_v49, %v1384_v50 }
 0x268   : > { %v1387_v51 = vpop.f32.mrf.mxu1 }
 0x269   : > { %1065 = vst.msk [vmem:[%s240_s14 + $0x10] sm:$0xff] %vm2717_vm0, %v1386_v52 }
 0x26a   : > { %v1388_v54 = vpop.f32.mrf.mxu1 }
 0x26b   : > { %v1389_v53 = vadd.f32 %v1388_v54, %v1387_v51 }
 0x26d   : > { %1066 = vst.msk [vmem:[%s240_s14 + $0x18] sm:$0xff] %vm2718_vm12, %v1389_v53 }
 0x26e PF: > { %p1456_p4 = scmp.ge.s32.totalorder %s1582_s20, 2  ;;  %s1115_s25 = sand.u32 1, %s1562_s15  }
 0x26f   : > { %s1116_s5 = scalar_lea.sflag [#allocation3], %s1115_s25 }
 0x270   : > { %p1453_p0 = pnand %p1456_p4, %p1658_p8 }
 0x272   : > { %p1454_p1 = pneg %p1453_p0 }
 0x274   : > { %1557 = dma.done.wait (%p1454_p1), %s1116_s5, 16  }
 0x275   : > { %1559 = vsyncadd (%p1454_p1), %s1116_s5, 4294967280  ;;  %s18_s20 = sadd.s32 1, %s1582_s20   ;;  %s2719_s15 = smov %s1566_s16 }
 0x276   : > { %p15_p2 = scmp.ge.s32.totalorder %s18_s20, 4   ;;  %s2720_s16 = smov %s1570_s17 }
 0x277   : > { %s2721_s17 = smov %s1664_s28  ;;  %s2722_s18 = smov %s1578_s19 }
 0x278   : > { %s2723_s19 = smov %s2725_s23  ;;  %17 = sbr.rel (!%p15_p2) target bundleno = 4 (0x4), region = 79 }
 0x27d   :  { %1120 = vsyncpa [#allocation3], 1 }
 0x27e   :  { %1122 = vsyncpa [#allocation3 + $0x1], 1 }

</bundles_post_ra>
